<compile_context>
chip_gen: v5e
topology: v5e:2x2
jax: 0.10.0
libtpu: 0.0.40
codegen_flags: <defaults>
</compile_context>

<pallas_src>
import functools

import jax
import jax.numpy as jnp
from jax.experimental import pallas as pl
from jax.experimental.pallas import tpu as pltpu


# Compact lane slab for the cls(7) + FERhead(6) outputs: cols 0:7 cls, 7:13 FER.
_AF_OUT_W = 16


# ------------------------------- fused kernel --------------------------------


def cef_fused_kernel(x_ref, wb_ref, w1_ref, b1_ref,
                     w2af_ref, b2af_ref, w2h_ref, b2h_ref,
                     out_af_ref, out_h_ref, *, af_hidden):
    # ---- synthetic backbone: ONE MXU pass (averaging folded into wb) --------
    feat = jnp.dot(x_ref[...], wb_ref[...],
                   preferred_element_type=jnp.float32).astype(jnp.bfloat16)

    # ---- fused fc1 of cls + FERhead + head (BatchNorm folded in) ------------
    hg = jnp.dot(feat, w1_ref[...], preferred_element_type=jnp.float32)
    hg = jnp.maximum(hg + b1_ref[...], 0.0)              # bias + ReLU in f32 (VPU)
    h = hg[:, :af_hidden].astype(jnp.bfloat16)           # cls+FER hidden (lane-aligned 2048)
    g = hg[:, af_hidden:].astype(jnp.bfloat16)           # shared-head hidden

    # ---- cls + FERhead fc2 (block-diagonal, compact 16-lane output) ---------
    y = jnp.dot(h, w2af_ref[...], preferred_element_type=jnp.float32)
    out_af_ref[...] = jax.nn.sigmoid(y + b2af_ref[...])

    # ---- shared `head` fc2 (all rows; b / c row slices taken outside) -------
    z = jnp.dot(g, w2h_ref[...], preferred_element_type=jnp.float32)
    out_h_ref[...] = z + b2h_ref[...]


# ------------------------------ Pallas wrapper --------------------------------


def _full_spec(shape):
    nd = len(shape)
    return pl.BlockSpec(shape, lambda i, _nd=nd: (0,) * _nd)


def cef_forward(x, params, *, lengths, hidden, n_cls, n_fer):
    """x: (B, C, H, W) NCHW. Returns (sigmoid(cls(a)), sigmoid(FERhead(a)), head(b), head(c))."""
    B = x.shape[0]
    # Lane/sublane alignment requirements of the fused layout (see perf review).
    assert B % 3 == 0, "CEF forward assumes B divisible by 3"
    assert lengths % 128 == 0, "fused layout requires lengths % 128 == 0"
    assert hidden % 128 == 0, "fused fc1 slicing requires hidden % 128 == 0"
    assert n_cls + n_fer <= _AF_OUT_W

    x_flat = x.reshape(B, -1).astype(jnp.bfloat16)
    Bp = ((B + 7) // 8) * 8                       # pad batch to sublane multiple
    x_pad = jnp.pad(x_flat, ((0, Bp - B), (0, 0)))

    args = (x_pad, params["wb"], params["w1"], params["b1"],
            params["w2af"], params["b2af"], params["w2h"], params["b2h"])

    af_hidden = 2 * hidden
    flat_dim = x_flat.shape[1]

    # Advisory cost hint for the XLA scheduler.
    flops = 2 * Bp * (flat_dim * lengths            # backbone
                      + lengths * 3 * hidden        # fused fc1
                      + af_hidden * _AF_OUT_W       # cls+FER fc2
                      + hidden * lengths)           # head fc2
    bytes_accessed = (sum(int(a.size) * int(a.dtype.itemsize) for a in args)
                      + Bp * _AF_OUT_W * 4 + Bp * lengths * 4)

    out_af, out_h = pl.pallas_call(
        functools.partial(cef_fused_kernel, af_hidden=af_hidden),
        grid=(1,),
        in_specs=[_full_spec(a.shape) for a in args],
        out_specs=(_full_spec((Bp, _AF_OUT_W)), _full_spec((Bp, lengths))),
        out_shape=(jax.ShapeDtypeStruct((Bp, _AF_OUT_W), jnp.float32),
                   jax.ShapeDtypeStruct((Bp, lengths), jnp.float32)),
        compiler_params=pltpu.CompilerParams(dimension_semantics=("arbitrary",)),
        cost_estimate=pl.CostEstimate(flops=int(flops),
                                      transcendentals=int(Bp * _AF_OUT_W),
                                      bytes_accessed=int(bytes_accessed)),
    )(*args)

    na = B // 3
    out_cls = out_af[:na, :n_cls]
    out_fer = out_af[:na, n_cls:n_cls + n_fer]
    out_b = out_h[na:2 * na, :]
    out_c = out_h[2 * na:B, :]
    return out_cls, out_fer, out_b, out_c


# --------------------------- parameter construction --------------------------


def init_linear(key, fan_in, fan_out):
    """PyTorch nn.Linear-style uniform(-1/sqrt(fan_in), 1/sqrt(fan_in)) init."""
    kw, kb = jax.random.split(key)
    bound = 1.0 / jnp.sqrt(jnp.float32(fan_in))
    w = jax.random.uniform(kw, (fan_in, fan_out), jnp.float32, -bound, bound)
    b = jax.random.uniform(kb, (fan_out,), jnp.float32, -bound, bound)
    return w, b


def init_mlp_folded(key, input_dim, hidden_dim, output_dim):
    """fc1 with eval-mode BatchNorm1d folded in (gamma=1, beta=0, mean=0, var=1)."""
    k1, k2 = jax.random.split(key)
    w1, b1 = init_linear(k1, input_dim, hidden_dim)
    w2, b2 = init_linear(k2, hidden_dim, output_dim)
    eps = 1e-5
    scale = 1.0 / jnp.sqrt(1.0 + eps)
    shift = 0.0
    return w1 * scale, b1 * scale + shift, w2, b2


def build_params(key, flat_dim, d1, d2, hidden, n_cls, n_fer):
    lengths = d1 + d2
    kp, kr1, kr2, kcls, khead, kfer = jax.random.split(key, 6)

    # Deterministic synthetic backbone projections (output-contract stand-ins).
    wp = 0.02 * jax.random.normal(kp, (flat_dim, d1), jnp.float32)
    wr1 = 0.02 * jax.random.normal(kr1, (flat_dim, d2), jnp.float32)
    wr2 = 0.02 * jax.random.normal(kr2, (flat_dim, d2), jnp.float32)
    # feat2 averaging folded into the weight (exact, since the op is linear):
    # feat = x @ [wp | 0.5*(wr1+wr2)]  ==  cat([x@wp, (x@wr1 + x@wr2)/2], dim=1)
    wb = jnp.concatenate([wp, 0.5 * (wr1 + wr2)], axis=1)        # (flat_dim, lengths)

    w1c, b1c, w2c, b2c = init_mlp_folded(kcls, lengths, hidden, n_cls)      # self.cls
    w1f, b1f, w2f, b2f = init_mlp_folded(kfer, lengths, hidden, n_fer)      # self.FERhead
    w1h, b1h, w2h, b2h = init_mlp_folded(khead, lengths, hidden, lengths)   # self.head

    # Fused fc1 for all three MLPs: one (lengths, 3*hidden) slab, one bias pass.
    w1 = jnp.concatenate([w1c, w1f, w1h], axis=1)               # (lengths, 3*hidden)
    b1 = jnp.concatenate([b1c, b1f, b1h], axis=0)[None, :]      # (1, 3*hidden)

    # cls + FERhead fc2: block-diagonal into a COMPACT 16-lane output slab
    # (cols 0:7 cls, 7:13 FERhead) — no 128-wide zero padding shipped over HBM.
    w2af = jnp.zeros((2 * hidden, _AF_OUT_W), jnp.float32)
    w2af = w2af.at[:hidden, :n_cls].set(w2c)
    w2af = w2af.at[hidden:, n_cls:n_cls + n_fer].set(w2f)
    b2af = jnp.zeros((1, _AF_OUT_W), jnp.float32)
    b2af = b2af.at[0, :n_cls].set(b2c)
    b2af = b2af.at[0, n_cls:n_cls + n_fer].set(b2f)

    bf16 = lambda a: a.astype(jnp.bfloat16)
    params = {
        "wb": bf16(wb),
        "w1": bf16(w1), "b1": b1,
        "w2af": bf16(w2af), "b2af": b2af,
        "w2h": bf16(w2h), "b2h": b2h[None, :],
    }
    # f32 copies for the pure-JAX reference.
    ref = {"wp": wp, "wr1": wr1, "wr2": wr2,
           "cls": (w1c, b1c, w2c, b2c),
           "fer": (w1f, b1f, w2f, b2f),
           "head": (w1h, b1h, w2h, b2h)}
    return params, ref


# ------------------------------ pure-JAX reference ----------------------------


def cef_reference(x, ref):
    B = x.shape[0]
    xf = x.reshape(B, -1)
    f1 = xf @ ref["wp"]
    f2 = 0.5 * (xf @ ref["wr1"] + xf @ ref["wr2"])
    feat = jnp.concatenate([f1, f2], axis=1)
    a = feat[:B // 3]
    b = feat[B // 3:2 * (B // 3)]
    c = feat[2 * (B // 3):]

    def mlp(v, p):
        w1, b1, w2, b2 = p
        return jnp.maximum(v @ w1 + b1, 0.0) @ w2 + b2

    return (jax.nn.sigmoid(mlp(a, ref["cls"])),
            jax.nn.sigmoid(mlp(a, ref["fer"])),
            mlp(b, ref["head"]),
            mlp(c, ref["head"]))


# ------------------------------------ main ------------------------------------

if __name__ == "__main__":
    # Small shapes: B=6 (divisible by 3), NCHW input (6, 3, 16, 16).
    B, C, H, W = 6, 3, 16, 16
    flat_dim = C * H * W                # 768
    D1, D2 = 64, 64                     # synthetic backbone output dims
    lengths = D1 + D2                   # 128 -> MLP input_dim
    hidden = 1024                       # per MLP(lengths, 1024, ...)
    n_cls, n_fer = 7, 6

    root = jax.random.PRNGKey(0)
    kx, kparams = jax.random.split(root)
    x = jax.random.normal(kx, (B, C, H, W), jnp.float32)
    params, ref = build_params(kparams, flat_dim, D1, D2, hidden, n_cls, n_fer)

    outs = cef_forward(x, params, lengths=lengths, hidden=hidden,
                       n_cls=n_cls, n_fer=n_fer)
    outs = jax.block_until_ready(outs)
    out_cls, out_fer, out_b, out_c = outs

    assert out_cls.shape == (B // 3, n_cls)
    assert out_fer.shape == (B // 3, n_fer)
    assert out_b.shape == (B // 3, lengths)
    assert out_c.shape == (B - 2 * (B // 3), lengths)
    assert bool(jnp.all((out_cls >= 0) & (out_cls <= 1)))
    assert bool(jnp.all((out_fer >= 0) & (out_fer <= 1)))

    # Loose-tolerance check vs. a pure-JAX f32 reference (kernel uses bf16 MXU inputs).
    refs = cef_reference(x.astype(jnp.float32), ref)
    for got, want in zip(outs, refs):
        err = float(jnp.max(jnp.abs(got.astype(jnp.float32) - want)))
        assert err < 5e-2, f"max abs error vs reference: {err}"

    print("KERNEL_OK")
</pallas_src>

<mosaic_0001>
module attributes {stable_mosaic.version = 11 : i64} {
  func.func @cef_fused_kernel(%arg0: i32, %arg1: memref<8x768xbf16, #tpu.memory_space<vmem>>, %arg2: memref<768x128xbf16, #tpu.memory_space<vmem>>, %arg3: memref<128x3072xbf16, #tpu.memory_space<vmem>>, %arg4: memref<1x3072xf32, #tpu.memory_space<vmem>>, %arg5: memref<2048x16xbf16, #tpu.memory_space<vmem>>, %arg6: memref<1x16xf32, #tpu.memory_space<vmem>>, %arg7: memref<1024x128xbf16, #tpu.memory_space<vmem>>, %arg8: memref<1x128xf32, #tpu.memory_space<vmem>>, %arg9: memref<8x16xf32, #tpu.memory_space<vmem>>, %arg10: memref<8x128xf32, #tpu.memory_space<vmem>>) attributes {dimension_semantics = [#tpu.dimension_semantics<arbitrary>], iteration_bounds = array<i64: 1>, scalar_prefetch = 0 : i64, scratch_operands = 0 : i64, tpu.core_type = #tpu.core_type<tc>, window_params = [{pipeline_mode = #tpu.pipeline_mode<synchronous>, transform_indices = @transform_0, window_bounds = array<i64: 8, 768>}, {pipeline_mode = #tpu.pipeline_mode<synchronous>, transform_indices = @transform_1, window_bounds = array<i64: 768, 128>}, {pipeline_mode = #tpu.pipeline_mode<synchronous>, transform_indices = @transform_2, window_bounds = array<i64: 128, 3072>}, {pipeline_mode = #tpu.pipeline_mode<synchronous>, transform_indices = @transform_3, window_bounds = array<i64: 1, 3072>}, {pipeline_mode = #tpu.pipeline_mode<synchronous>, transform_indices = @transform_4, window_bounds = array<i64: 2048, 16>}, {pipeline_mode = #tpu.pipeline_mode<synchronous>, transform_indices = @transform_5, window_bounds = array<i64: 1, 16>}, {pipeline_mode = #tpu.pipeline_mode<synchronous>, transform_indices = @transform_6, window_bounds = array<i64: 1024, 128>}, {pipeline_mode = #tpu.pipeline_mode<synchronous>, transform_indices = @transform_7, window_bounds = array<i64: 1, 128>}, {pipeline_mode = #tpu.pipeline_mode<synchronous>, transform_indices = @transform_8, window_bounds = array<i64: 8, 16>}, {pipeline_mode = #tpu.pipeline_mode<synchronous>, transform_indices = @transform_9, window_bounds = array<i64: 8, 128>}]} {
    %c0 = arith.constant 0 : index
    %c0_0 = arith.constant 0 : index
    %0 = vector.load %arg1[%c0, %c0_0] : memref<8x768xbf16, #tpu.memory_space<vmem>>, vector<8x768xbf16>
    %c0_1 = arith.constant 0 : index
    %c0_2 = arith.constant 0 : index
    %1 = vector.load %arg2[%c0_1, %c0_2] : memref<768x128xbf16, #tpu.memory_space<vmem>>, vector<768x128xbf16>
    %cst = arith.constant dense<0.000000e+00> : vector<8x128xf32>
    %2 = tpu.matmul %0, %1, %cst {dimension_numbers = #tpu.dot_dimension_numbers<[1], [0], [0], [1], [0, 0, 1, 1], [], []>} : vector<8x768xbf16>, vector<768x128xbf16>, vector<8x128xf32> -> vector<8x128xf32>
    %3 = arith.truncf %2 : vector<8x128xf32> to vector<8x128xbf16>
    %c0_3 = arith.constant 0 : index
    %c0_4 = arith.constant 0 : index
    %4 = vector.load %arg3[%c0_3, %c0_4] : memref<128x3072xbf16, #tpu.memory_space<vmem>>, vector<128x3072xbf16>
    %cst_5 = arith.constant dense<0.000000e+00> : vector<8x3072xf32>
    %5 = tpu.matmul %3, %4, %cst_5 {dimension_numbers = #tpu.dot_dimension_numbers<[1], [0], [0], [1], [0, 0, 1, 1], [], []>} : vector<8x128xbf16>, vector<128x3072xbf16>, vector<8x3072xf32> -> vector<8x3072xf32>
    %c0_6 = arith.constant 0 : index
    %c0_7 = arith.constant 0 : index
    %6 = vector.load %arg4[%c0_6, %c0_7] : memref<1x3072xf32, #tpu.memory_space<vmem>>, vector<1x3072xf32>
    %7 = vector.broadcast %6 : vector<1x3072xf32> to vector<8x3072xf32>
    %8 = arith.addf %5, %7 : vector<8x3072xf32>
    %cst_8 = arith.constant 0.000000e+00 : f32
    %9 = vector.broadcast %cst_8 : f32 to vector<8x3072xf32>
    %10 = arith.maximumf %8, %9 : vector<8x3072xf32>
    %11 = vector.extract_strided_slice %10 {offsets = [0, 0], sizes = [8, 2048], strides = [1, 1]} : vector<8x3072xf32> to vector<8x2048xf32>
    %12 = arith.truncf %11 : vector<8x2048xf32> to vector<8x2048xbf16>
    %13 = vector.extract_strided_slice %10 {offsets = [0, 2048], sizes = [8, 1024], strides = [1, 1]} : vector<8x3072xf32> to vector<8x1024xf32>
    %14 = arith.truncf %13 : vector<8x1024xf32> to vector<8x1024xbf16>
    %c0_9 = arith.constant 0 : index
    %c0_10 = arith.constant 0 : index
    %15 = vector.load %arg5[%c0_9, %c0_10] : memref<2048x16xbf16, #tpu.memory_space<vmem>>, vector<2048x16xbf16>
    %cst_11 = arith.constant dense<0.000000e+00> : vector<8x16xf32>
    %16 = tpu.matmul %12, %15, %cst_11 {dimension_numbers = #tpu.dot_dimension_numbers<[1], [0], [0], [1], [0, 0, 1, 1], [], []>} : vector<8x2048xbf16>, vector<2048x16xbf16>, vector<8x16xf32> -> vector<8x16xf32>
    %c0_12 = arith.constant 0 : index
    %c0_13 = arith.constant 0 : index
    %17 = vector.load %arg6[%c0_12, %c0_13] : memref<1x16xf32, #tpu.memory_space<vmem>>, vector<1x16xf32>
    %18 = vector.broadcast %17 : vector<1x16xf32> to vector<8x16xf32>
    %19 = arith.addf %16, %18 : vector<8x16xf32>
    %20 = arith.negf %19 : vector<8x16xf32>
    %21 = math.exp %20 : vector<8x16xf32>
    %cst_14 = arith.constant 1.000000e+00 : f32
    %22 = vector.broadcast %cst_14 : f32 to vector<8x16xf32>
    %23 = arith.addf %22, %21 : vector<8x16xf32>
    %24 = arith.divf %22, %23 : vector<8x16xf32>
    %c0_15 = arith.constant 0 : index
    %c0_16 = arith.constant 0 : index
    %25 = vector.load %arg9[%c0_15, %c0_16] : memref<8x16xf32, #tpu.memory_space<vmem>>, vector<8x16xf32>
    tpu.vector_store %arg9[%c0_15, %c0_16], %24 {strides = array<i32>} : memref<8x16xf32, #tpu.memory_space<vmem>>, vector<8x16xf32>,
    %c0_17 = arith.constant 0 : index
    %c0_18 = arith.constant 0 : index
    %26 = vector.load %arg7[%c0_17, %c0_18] : memref<1024x128xbf16, #tpu.memory_space<vmem>>, vector<1024x128xbf16>
    %cst_19 = arith.constant dense<0.000000e+00> : vector<8x128xf32>
    %27 = tpu.matmul %14, %26, %cst_19 {dimension_numbers = #tpu.dot_dimension_numbers<[1], [0], [0], [1], [0, 0, 1, 1], [], []>} : vector<8x1024xbf16>, vector<1024x128xbf16>, vector<8x128xf32> -> vector<8x128xf32>
    %c0_20 = arith.constant 0 : index
    %c0_21 = arith.constant 0 : index
    %28 = vector.load %arg8[%c0_20, %c0_21] : memref<1x128xf32, #tpu.memory_space<vmem>>, vector<1x128xf32>
    %29 = vector.broadcast %28 : vector<1x128xf32> to vector<8x128xf32>
    %30 = arith.addf %27, %29 : vector<8x128xf32>
    %c0_22 = arith.constant 0 : index
    %c0_23 = arith.constant 0 : index
    %31 = vector.load %arg10[%c0_22, %c0_23] : memref<8x128xf32, #tpu.memory_space<vmem>>, vector<8x128xf32>
    tpu.vector_store %arg10[%c0_22, %c0_23], %30 {strides = array<i32>} : memref<8x128xf32, #tpu.memory_space<vmem>>, vector<8x128xf32>,
    return
  }
  func.func @transform_0(%arg0: i32) -> (i32, i32) {
    %c0_i32 = arith.constant 0 : i32
    %c0_i32_0 = arith.constant 0 : i32
    %c0_i32_1 = arith.constant 0 : i32
    return %c0_i32, %c0_i32_0 : i32, i32
  }
  func.func @transform_1(%arg0: i32) -> (i32, i32) {
    %c0_i32 = arith.constant 0 : i32
    %c0_i32_0 = arith.constant 0 : i32
    %c0_i32_1 = arith.constant 0 : i32
    return %c0_i32, %c0_i32_0 : i32, i32
  }
  func.func @transform_2(%arg0: i32) -> (i32, i32) {
    %c0_i32 = arith.constant 0 : i32
    %c0_i32_0 = arith.constant 0 : i32
    %c0_i32_1 = arith.constant 0 : i32
    return %c0_i32, %c0_i32_0 : i32, i32
  }
  func.func @transform_3(%arg0: i32) -> (i32, i32) {
    %c0_i32 = arith.constant 0 : i32
    %c0_i32_0 = arith.constant 0 : i32
    %c0_i32_1 = arith.constant 0 : i32
    return %c0_i32, %c0_i32_0 : i32, i32
  }
  func.func @transform_4(%arg0: i32) -> (i32, i32) {
    %c0_i32 = arith.constant 0 : i32
    %c0_i32_0 = arith.constant 0 : i32
    %c0_i32_1 = arith.constant 0 : i32
    return %c0_i32, %c0_i32_0 : i32, i32
  }
  func.func @transform_5(%arg0: i32) -> (i32, i32) {
    %c0_i32 = arith.constant 0 : i32
    %c0_i32_0 = arith.constant 0 : i32
    %c0_i32_1 = arith.constant 0 : i32
    return %c0_i32, %c0_i32_0 : i32, i32
  }
  func.func @transform_6(%arg0: i32) -> (i32, i32) {
    %c0_i32 = arith.constant 0 : i32
    %c0_i32_0 = arith.constant 0 : i32
    %c0_i32_1 = arith.constant 0 : i32
    return %c0_i32, %c0_i32_0 : i32, i32
  }
  func.func @transform_7(%arg0: i32) -> (i32, i32) {
    %c0_i32 = arith.constant 0 : i32
    %c0_i32_0 = arith.constant 0 : i32
    %c0_i32_1 = arith.constant 0 : i32
    return %c0_i32, %c0_i32_0 : i32, i32
  }
  func.func @transform_8(%arg0: i32) -> (i32, i32) {
    %c0_i32 = arith.constant 0 : i32
    %c0_i32_0 = arith.constant 0 : i32
    %c0_i32_1 = arith.constant 0 : i32
    return %c0_i32, %c0_i32_0 : i32, i32
  }
  func.func @transform_9(%arg0: i32) -> (i32, i32) {
    %c0_i32 = arith.constant 0 : i32
    %c0_i32_0 = arith.constant 0 : i32
    %c0_i32_1 = arith.constant 0 : i32
    return %c0_i32, %c0_i32_0 : i32, i32
  }
}

</mosaic_0001>

<bundles_post_ra>
// kernel: tpu_custom_call.1
= control target key start
LH: loop header
LB: loop body
LE: loop exit
PB: predicated region body
PF: predicated region fallthrough
CT: control target
= control target key end

     0   :  { %15 = vsyncpa [#allocation3], 0  ;;  %s7187_s0 = inlined_call_operand.vmem [shape: bf16[8,768], index: 0, kind: input, shape index: {}]   ;;  %s7188_s1 = inlined_call_operand.vmem [shape: bf16[768,128], index: 1, kind: input, shape index: {}]   ;;  %s7189_s2 = inlined_call_operand.hbm [shape: bf16[128,3072], index: 2, kind: input, shape index: {}]   ;;  %s7190_s3 = inlined_call_operand.vmem [shape: f32[1,3072], index: 3, kind: input, shape index: {}]   ;;  %s7191_s4 = inlined_call_operand.vmem [shape: bf16[2048,16], index: 4, kind: input, shape index: {}]   ;;  %s7192_s5 = inlined_call_operand.vmem [shape: f32[1,16], index: 5, kind: input, shape index: {}]   ;;  %s7193_s6 = inlined_call_operand.vmem [shape: bf16[1024,128], index: 6, kind: input, shape index: {}]   ;;  %s7194_s7 = inlined_call_operand.vmem [shape: f32[1,128], index: 7, kind: input, shape index: {}]   ;;  %s7195_s8 = inlined_call_operand.hbm [shape: f32[8,16], index: 8, kind: output, shape index: {0}]   ;;  %s7196_s9 = inlined_call_operand.hbm [shape: f32[8,128], index: 9, kind: output, shape index: {1}]  }
   0x1   :  { %16 = vsyncpa [#allocation4], 0 }
   0x2   :  { %17 = vsyncpa [#allocation7], 0  ;;  %s26_s11 = sshll.u32 %s7189_s2, 4  ;;  %s6263_s12 = smov [#allocation2]   ;;  %s27_s11 = int_to_ptr.hbm [resolvable:$true] %s26_s11 }
   0x3   :  { %s28_s13 = sshll.u32 %s6263_s12, 4  ;;  %s6264_s14 = smov 1536   ;;  %s29_s13 = int_to_ptr.vmem [resolvable:$true] %s28_s13 }
   0x4   :  { %s6265_s15 = smov 96  }
   0x5   :  { %34 = dma.hbm_to_vmem [thread:$0]  %s27_s11, 24576, %s29_s13, [#allocation3], %s6264_s14, %s6264_s14, %s6265_s15  }
   0x6   :  { %6257 = dma.done.wait [#allocation3], 24576  }
   0x7   :  { %6258 = vsyncadd [#allocation3], 4294942720  ;;  %v5749_v0 = vld [vmem:[%s7188_s1 + $0x38] sm:$0xff]  ;;  %v5748_v2 = vld [vmem:[%s7188_s1 + $0x30] sm:$0xff]  ;;  %vm3357_vm3 = vcmask 130048   ;;  %s3998_s11 = sshll.u32 %s7196_s9, 4  ;;  %s3999_s11 = int_to_ptr.hbm [resolvable:$true] %s3998_s11 }
   0x8   :  { %v5757_v1 = vld [vmem:[%s7188_s1 + $0x78] sm:$0xff]  ;;  %457 = vmatpush.bf16.msra.mxu0 %v5749_v0  ;;  %v5756_v3 = vld [vmem:[%s7188_s1 + $0x70] sm:$0xff]  ;;  %v5747_v8 = vld [vmem:[%s7188_s1 + $0x28] sm:$0xff] }
   0x9   :  { %470 = vmatpush.bf16.msra.mxu1 %v5757_v1  ;;  %v5765_v4 = vld [vmem:[%s7188_s1 + $0xb8] sm:$0xff]  ;;  %v5764_v6 = vld [vmem:[%s7188_s1 + $0xb0] sm:$0xff]  ;;  %v5755_v9 = vld [vmem:[%s7188_s1 + $0x68] sm:$0xff] }
   0xa   :  { %v5773_v5 = vld [vmem:[%s7188_s1 + $0xf8] sm:$0xff]  ;;  %483 = vmatpush.bf16.msra.mxu2 %v5765_v4  ;;  %v5772_v7 = vld [vmem:[%s7188_s1 + $0xf0] sm:$0xff]  ;;  %v5763_v10 = vld [vmem:[%s7188_s1 + $0xa8] sm:$0xff] }
   0xb   :  { %496 = vmatpush.bf16.msra.mxu3 %v5773_v5  ;;  %v5771_v11 = vld [vmem:[%s7188_s1 + $0xe8] sm:$0xff]  ;;  %v5746_v12 = vld [vmem:[%s7188_s1 + $0x20] sm:$0xff]  ;;  %v5745_v16 = vld [vmem:[%s7188_s1 + $0x18] sm:$0xff] }
   0xc   :  { %458 = vmatpush.bf16.msra.mxu0 %v5748_v2  ;;  %v5754_v13 = vld [vmem:[%s7188_s1 + $0x60] sm:$0xff]  ;;  %v5753_v17 = vld [vmem:[%s7188_s1 + $0x58] sm:$0xff]  ;;  %v5744_v20 = vld [vmem:[%s7188_s1 + $0x10] sm:$0xff] }
   0xd   :  { %471 = vmatpush.bf16.msra.mxu1 %v5756_v3  ;;  %v5762_v14 = vld [vmem:[%s7188_s1 + $0xa0] sm:$0xff]  ;;  %v5761_v18 = vld [vmem:[%s7188_s1 + $0x98] sm:$0xff]  ;;  %v5752_v21 = vld [vmem:[%s7188_s1 + $0x50] sm:$0xff] }
   0xe   :  { %484 = vmatpush.bf16.msra.mxu2 %v5764_v6  ;;  %v5770_v15 = vld [vmem:[%s7188_s1 + $0xe0] sm:$0xff]  ;;  %v5769_v19 = vld [vmem:[%s7188_s1 + $0xd8] sm:$0xff]  ;;  %v5760_v22 = vld [vmem:[%s7188_s1 + $0x90] sm:$0xff] }
   0xf   :  { %497 = vmatpush.bf16.msra.mxu3 %v5772_v7  ;;  %v5768_v23 = vld [vmem:[%s7188_s1 + $0xd0] sm:$0xff]  ;;  %v5743_v24 = vld [vmem:[%s7188_s1 + $0x8] sm:$0xff]  ;;  %v49_v26 = vld [vmem:[%s7187_s0] sm:$0xff] }
  0x10   :  { %459 = vmatpush.bf16.msra.mxu0 %v5747_v8  ;;  %v5751_v25 = vld [vmem:[%s7188_s1 + $0x48] sm:$0xff]  ;;  %v151_v29 = vunpack.c.l.b16 %v49_v26  ;;  %v152_v30 = vunpack.c.h.b16 %v49_v26  ;;  %v5742_v32 = vld [vmem:[%s7188_s1] sm:$0xff]  ;;  %v5781_v34 = vld [vmem:[%s7188_s1 + $0x138] sm:$0xff] }
  0x11   :  { %472 = vmatpush.bf16.msra.mxu1 %v5755_v9  ;;  %v5759_v27 = vld [vmem:[%s7188_s1 + $0x88] sm:$0xff]  ;;  %v5750_v33 = vld [vmem:[%s7188_s1 + $0x40] sm:$0xff]  ;;  %v5789_v35 = vld [vmem:[%s7188_s1 + $0x178] sm:$0xff] }
  0x12   :  { %485 = vmatpush.bf16.msra.mxu2 %v5763_v10  ;;  %v5767_v28 = vld [vmem:[%s7188_s1 + $0xc8] sm:$0xff]  ;;  %v5758_v36 = vld [vmem:[%s7188_s1 + $0x80] sm:$0xff]  ;;  %v157_v40 = vpack.c.b16 %v151_v29, %v151_v29  ;;  %v158_v41 = vpack.c.b16 %v152_v30, %v152_v30  ;;  %v5780_v45 = vld [vmem:[%s7188_s1 + $0x130] sm:$0xff] }
  0x13   :  { %498 = vmatpush.bf16.msra.mxu3 %v5771_v11  ;;  %v50_v31 = vld [vmem:[%s7187_s0 + $0x8] sm:$0xff]  ;;  %v5766_v37 = vld [vmem:[%s7188_s1 + $0xc0] sm:$0xff]  ;;  %v5788_v46 = vld [vmem:[%s7188_s1 + $0x170] sm:$0xff] }
  0x14   :  { %460 = vmatpush.bf16.msra.mxu0 %v5746_v12  ;;  %v153_v38 = vunpack.c.l.b16 %v50_v31  ;;  %v154_v39 = vunpack.c.h.b16 %v50_v31  ;;  %v4879_v42 = vld [vmem:[#allocation2 + $0x540] sm:$0xf]  ;;  %v5958_v44 = vld [vmem:[#allocation2 + $0x544] sm:$0xf]  ;;  %v5779_v56 = vld [vmem:[%s7188_s1 + $0x128] sm:$0xff] }
  0x15   :  { %473 = vmatpush.bf16.msra.mxu1 %v5754_v13  ;;  %v5970_v43 = vld [vmem:[#allocation2 + $0x59c] sm:$0xf0]  ;;  %v4881_v48 = vld [vmem:[#allocation2 + $0x5a0] sm:$0xf0]  ;;  %v5787_v59 = vld [vmem:[%s7188_s1 + $0x168] sm:$0xff] }
  0x16   :  { %486 = vmatpush.bf16.msra.mxu2 %v5762_v14  ;;  %v4880_v47 = vor.u32 %v5970_v43, %v4879_v42  ;;  %v159_v49 = vpack.c.b16 %v153_v38, %v153_v38  ;;  %v160_v50 = vpack.c.b16 %v154_v39, %v154_v39  ;;  %v4884_v51 = vor.u32 %v5958_v44, %v4881_v48  ;;  %v4783_v52 = vld [vmem:[#allocation2 + $0x480] sm:$0xf]  ;;  %v5934_v54 = vld [vmem:[#allocation2 + $0x484] sm:$0xf]  ;;  %v5777_v8 = vld [vmem:[%s7188_s1 + $0x118] sm:$0xff] }
  0x17   :  { %499 = vmatpush.bf16.msra.mxu3 %v5770_v15  ;;  %v5946_v53 = vld [vmem:[#allocation2 + $0x4dc] sm:$0xf0]  ;;  %v4785_v55 = vld [vmem:[#allocation2 + $0x4e0] sm:$0xf0]  ;;  %v5785_v9 = vld [vmem:[%s7188_s1 + $0x158] sm:$0xff] }
  0x18   :  { %461 = vmatpush.bf16.msra.mxu0 %v5745_v16  ;;  %v4784_v57 = vor.u32 %v5946_v53, %v4783_v52  ;;  %v4788_v58 = vor.u32 %v5934_v54, %v4785_v55  ;;  %v4687_v60 = vld [vmem:[#allocation2 + $0x3c0] sm:$0xf]  ;;  %v5910_v62 = vld [vmem:[#allocation2 + $0x3c4] sm:$0xf]  ;;  %v5776_v16 = vld [vmem:[%s7188_s1 + $0x110] sm:$0xff] }
  0x19   :  { %474 = vmatpush.bf16.msra.mxu1 %v5753_v17  ;;  %v5922_v61 = vld [vmem:[#allocation2 + $0x41c] sm:$0xf0]  ;;  %v4689_v63 = vld [vmem:[#allocation2 + $0x420] sm:$0xf0]  ;;  %v5784_v17 = vld [vmem:[%s7188_s1 + $0x150] sm:$0xff] }
  0x1a   :  { %487 = vmatpush.bf16.msra.mxu2 %v5761_v18  ;;  %v5778_v0 = vld [vmem:[%s7188_s1 + $0x120] sm:$0xff]  ;;  %v4688_v2 = vor.u32 %v5922_v61, %v4687_v60  ;;  %v4692_v3 = vor.u32 %v5910_v62, %v4689_v63  ;;  %v51_v26 = vld [vmem:[%s7187_s0 + $0x10] sm:$0xff]  ;;  %v4793_v48 = vld [vmem:[#allocation2 + $0x4e8] sm:$0xf0] }
  0x1b   :  { %500 = vmatpush.bf16.msra.mxu3 %v5769_v19  ;;  %v5786_v1 = vld [vmem:[%s7188_s1 + $0x160] sm:$0xff]  ;;  %v156_v38 = vunpack.c.h.b16 %v51_v26  ;;  %v4695_v53 = vld [vmem:[#allocation2 + $0x3c8] sm:$0xf]  ;;  %v5911_v55 = vld [vmem:[#allocation2 + $0x3cc] sm:$0xf] }
  0x1c   :  { %462 = vmatpush.bf16.msra.mxu0 %v5744_v20  ;;  %v4591_v4 = vld [vmem:[#allocation2 + $0x300] sm:$0xf]  ;;  %v5886_v6 = vld [vmem:[#allocation2 + $0x304] sm:$0xf]  ;;  %v5923_v54 = vld [vmem:[#allocation2 + $0x424] sm:$0xf0] }
  0x1d   :  { %475 = vmatpush.bf16.msra.mxu1 %v5752_v21  ;;  %v5898_v5 = vld [vmem:[#allocation2 + $0x35c] sm:$0xf0]  ;;  %v4593_v7 = vld [vmem:[#allocation2 + $0x360] sm:$0xf0]  ;;  %v5899_v60 = vld [vmem:[#allocation2 + $0x364] sm:$0xf0] }
  0x1e   :  { %488 = vmatpush.bf16.msra.mxu2 %v5760_v22  ;;  %v4592_v10 = vor.u32 %v5898_v5, %v4591_v4  ;;  %v4596_v11 = vor.u32 %v5886_v6, %v4593_v7  ;;  %v4495_v12 = vld [vmem:[#allocation2 + $0x240] sm:$0xf]  ;;  %v5862_v14 = vld [vmem:[#allocation2 + $0x244] sm:$0xf]  ;;  %v5887_v61 = vld [vmem:[#allocation2 + $0x30c] sm:$0xf] }
  0x1f   :  { %501 = vmatpush.bf16.msra.mxu3 %v5768_v23  ;;  %v5874_v13 = vld [vmem:[#allocation2 + $0x29c] sm:$0xf0]  ;;  %v4497_v15 = vld [vmem:[#allocation2 + $0x2a0] sm:$0xf0]  ;;  %v4601_v62 = vld [vmem:[#allocation2 + $0x368] sm:$0xf0] }
  0x20   :  { %463 = vmatpush.bf16.msra.mxu0 %v5743_v24  ;;  %v4496_v18 = vor.u32 %v5874_v13, %v4495_v12  ;;  %v4500_v19 = vor.u32 %v5862_v14, %v4497_v15  ;;  %v4399_v20 = vld [vmem:[#allocation2 + $0x180] sm:$0xf]  ;;  %v5838_v22 = vld [vmem:[#allocation2 + $0x184] sm:$0xf]  ;;  %v5775_v24 = vld [vmem:[%s7188_s1 + $0x108] sm:$0xff] }
  0x21   :  { %476 = vmatpush.bf16.msra.mxu1 %v5751_v25  ;;  %v5850_v21 = vld [vmem:[#allocation2 + $0x1dc] sm:$0xf0]  ;;  %v4401_v23 = vld [vmem:[#allocation2 + $0x1e0] sm:$0xf0]  ;;  %v5783_v25 = vld [vmem:[%s7188_s1 + $0x148] sm:$0xff] }
  0x22   :  { %489 = vmatpush.bf16.msra.mxu2 %v5759_v27  ;;  %v4400_v27 = vor.u32 %v5850_v21, %v4399_v20  ;;  %v4303_v29 = vld [vmem:[#allocation2 + $0xc0] sm:$0xf]  ;;  %v5814_v31 = vld [vmem:[#allocation2 + $0xc4] sm:$0xf]  ;;  %v4505_v4 = vld [vmem:[#allocation2 + $0x2a8] sm:$0xf0] }
  0x23   :  { %502 = vmatpush.bf16.msra.mxu3 %v5767_v28  ;;  %v4404_v28 = vor.u32 %v5838_v22, %v4401_v23  ;;  %v5826_v30 = vld [vmem:[#allocation2 + $0x11c] sm:$0xf0]  ;;  %v4407_v7 = vld [vmem:[#allocation2 + $0x188] sm:$0xf]  ;;  %v5815_v15 = vld [vmem:[#allocation2 + $0xcc] sm:$0xf] }
  0x24   :  { %464 = vmatpush.bf16.msra.mxu0 %v5742_v32  ;;  %v4305_v32 = vld [vmem:[#allocation2 + $0x120] sm:$0xf0]  ;;  %v4304_v39 = vor.u32 %v5826_v30, %v4303_v29  ;;  %v4311_v13 = vld [vmem:[#allocation2 + $0xc8] sm:$0xf]  ;;  %v5802_v20 = vld [vmem:[#allocation2 + $0x5c] sm:$0xf0] }
  0x25   :  { %477 = vmatpush.bf16.msra.mxu1 %v5750_v33  ;;  %v4887_v33 = vld [vmem:[#allocation2 + $0x548] sm:$0xf]  ;;  %v5782_v42 = vld [vmem:[%s7188_s1 + $0x140] sm:$0xff]  ;;  %v4217_v29 = vld [vmem:[#allocation2 + $0x68] sm:$0xf0] }
  0x26   :  { %490 = vmatpush.bf16.msra.mxu2 %v5758_v36  ;;  %v4889_v36 = vld [vmem:[#allocation2 + $0x5a8] sm:$0xf0]  ;;  %v5827_v14 = vld [vmem:[#allocation2 + $0x124] sm:$0xf0]  ;;  %v5790_v21 = vld [vmem:[#allocation2 + $0x4] sm:$0xf] }
  0x27   :  { %503 = vmatpush.bf16.msra.mxu3 %v5766_v37  ;;  %465 = vmatmul.bf16.vlgmr.msra.gmra.mxu0 %v157_v40  ;;  %v155_v37 = vunpack.c.l.b16 %v51_v26  ;;  %v4308_v40 = vor.u32 %v5814_v31, %v4305_v32  ;;  %v4209_v23 = vld [vmem:[#allocation2 + $0x60] sm:$0xf0]  ;;  %v4895_v30 = vld [vmem:[#allocation2 + $0x550] sm:$0xf] }
  0x28   :  { %509 = vmatpush.bf16.msrb.mxu0 %v5781_v34  ;;  %478 = vmatmul.bf16.vlgmr.msra.gmra.mxu1 %v158_v41  ;;  %v5971_v34 = vld [vmem:[#allocation2 + $0x5a4] sm:$0xf0]  ;;  %v5774_v41 = vld [vmem:[%s7188_s1 + $0x100] sm:$0xff]  ;;  %v4212_v26 = vor.u32 %v5790_v21, %v4209_v23  ;;  %v5972_v32 = vld [vmem:[#allocation2 + $0x5ac] sm:$0xf0] }
  0x29   :  { %522 = vmatpush.bf16.msrb.mxu1 %v5789_v35  ;;  %491 = vmatmul.bf16.vlgmr.msra.gmra.mxu2 %v159_v49  ;;  %v5959_v35 = vld [vmem:[#allocation2 + $0x54c] sm:$0xf]  ;;  %v4888_v43 = vor.u32 %v5971_v34, %v4887_v33  ;;  %v161_v49 = vpack.c.b16 %v155_v37, %v155_v37  ;;  %v5960_v33 = vld [vmem:[#allocation2 + $0x554] sm:$0xf]  ;;  %v4903_v37 = vld [vmem:[#allocation2 + $0x558] sm:$0xf] }
  0x2a   :  { %1742 = vmatpush.bf16.msrb.mxu2 %v4880_v47  ;;  %504 = vmatmul.bf16.vlgmr.msra.gmra.mxu3 %v160_v50  ;;  %v4892_v44 = vor.u32 %v5959_v35, %v4889_v36  ;;  %v5935_v47 = vld [vmem:[#allocation2 + $0x48c] sm:$0xf]  ;;  %v162_v50 = vpack.c.b16 %v156_v38, %v156_v38  ;;  %v4897_v34 = vld [vmem:[#allocation2 + $0x5b0] sm:$0xf0]  ;;  %v4896_v35 = vor.u32 %v5972_v32, %v4895_v30  ;;  %v5973_v38 = vld [vmem:[#allocation2 + $0x5b4] sm:$0xf0] }
  0x2b   :  { %1755 = vmatpush.bf16.msrb.mxu3 %v4884_v51  ;;  %v4796_v52 = vor.u32 %v5935_v47, %v4793_v48  ;;  %v4900_v36 = vor.u32 %v5960_v33, %v4897_v34  ;;  %v4801_v47 = vld [vmem:[#allocation2 + $0x4f0] sm:$0xf0]  ;;  %v4807_v48 = vld [vmem:[#allocation2 + $0x498] sm:$0xf]  ;;  %v5865_v21 = vld [vmem:[#allocation2 + $0x25c] sm:$0xf] }
  0x2c   :  { %510 = vmatpush.bf16.msrb.mxu0 %v5780_v45  ;;  %v4791_v45 = vld [vmem:[#allocation2 + $0x488] sm:$0xf]  ;;  %v5853_v32 = vld [vmem:[#allocation2 + $0x1f4] sm:$0xf0]  ;;  %v5841_v33 = vld [vmem:[#allocation2 + $0x19c] sm:$0xf] }
  0x2d   :  { %523 = vmatpush.bf16.msrb.mxu1 %v5788_v46  ;;  %v5947_v46 = vld [vmem:[#allocation2 + $0x4e4] sm:$0xf0]  ;;  %v4425_v34 = vld [vmem:[#allocation2 + $0x1f8] sm:$0xf0] }
  0x2e   :  { %1743 = vmatpush.bf16.msrb.mxu2 %v4784_v57  ;;  %v4792_v51 = vor.u32 %v5947_v46, %v4791_v45  ;;  %v4696_v57 = vor.u32 %v5923_v54, %v4695_v53  ;;  %v5936_v46 = vld [vmem:[#allocation2 + $0x494] sm:$0xf] }
  0x2f   :  { %1756 = vmatpush.bf16.msrb.mxu3 %v4788_v58 }
  0x30   :  { %511 = vmatpush.bf16.msrb.mxu0 %v5779_v56  ;;  %v4697_v56 = vld [vmem:[#allocation2 + $0x428] sm:$0xf0] }
  0x31   :  { %524 = vmatpush.bf16.msrb.mxu1 %v5787_v59  ;;  %v4700_v58 = vor.u32 %v5911_v55, %v4697_v56  ;;  %v4599_v59 = vld [vmem:[#allocation2 + $0x308] sm:$0xf]  ;;  %v4703_v55 = vld [vmem:[#allocation2 + $0x3d0] sm:$0xf] }
  0x32   :  { %1744 = vmatpush.bf16.msrb.mxu2 %v4688_v2  ;;  %v4600_v63 = vor.u32 %v5899_v60, %v4599_v59  ;;  %v5875_v2 = vld [vmem:[#allocation2 + $0x2a4] sm:$0xf0]  ;;  %v5924_v56 = vld [vmem:[#allocation2 + $0x42c] sm:$0xf0]  ;;  %v4705_v59 = vld [vmem:[#allocation2 + $0x430] sm:$0xf0] }
  0x33   :  { %1757 = vmatpush.bf16.msrb.mxu3 %v4692_v3  ;;  %v5863_v3 = vld [vmem:[#allocation2 + $0x24c] sm:$0xf]  ;;  %v4711_v60 = vld [vmem:[#allocation2 + $0x3d8] sm:$0xf] }
  0x34   :  { %512 = vmatpush.bf16.msrb.mxu0 %v5778_v0  ;;  %v4604_v0 = vor.u32 %v5887_v61, %v4601_v62  ;;  %v4508_v6 = vor.u32 %v5863_v3, %v4505_v4  ;;  %v5925_v61 = vld [vmem:[#allocation2 + $0x434] sm:$0xf0]  ;;  %v5900_v4 = vld [vmem:[#allocation2 + $0x36c] sm:$0xf0] }
  0x35   :  { %525 = vmatpush.bf16.msrb.mxu1 %v5786_v1  ;;  %v4503_v1 = vld [vmem:[#allocation2 + $0x248] sm:$0xf] }
  0x36   :  { %1745 = vmatpush.bf16.msrb.mxu2 %v4592_v10  ;;  %v4504_v5 = vor.u32 %v5875_v2, %v4503_v1  ;;  %v4409_v10 = vld [vmem:[#allocation2 + $0x1e8] sm:$0xf0]  ;;  %v4713_v1 = vld [vmem:[#allocation2 + $0x438] sm:$0xf0]  ;;  %v4607_v2 = vld [vmem:[#allocation2 + $0x310] sm:$0xf] }
  0x37   :  { %1758 = vmatpush.bf16.msrb.mxu3 %v4596_v11 }
  0x38   :  { %513 = vmatpush.bf16.msrb.mxu0 %v5777_v8  ;;  %v5851_v8 = vld [vmem:[#allocation2 + $0x1e4] sm:$0xf0] }
  0x39   :  { %526 = vmatpush.bf16.msrb.mxu1 %v5785_v9  ;;  %v5839_v9 = vld [vmem:[#allocation2 + $0x18c] sm:$0xf]  ;;  %v4408_v11 = vor.u32 %v5851_v8, %v4407_v7  ;;  %v4608_v7 = vor.u32 %v5900_v4, %v4607_v2 }
  0x3a   :  { %1746 = vmatpush.bf16.msrb.mxu2 %v4496_v18  ;;  %v4412_v12 = vor.u32 %v5839_v9, %v4409_v10  ;;  %v4615_v9 = vld [vmem:[#allocation2 + $0x318] sm:$0xf] }
  0x3b   :  { %1759 = vmatpush.bf16.msrb.mxu3 %v4500_v19  ;;  %v4207_v19 = vld [vmem:[#allocation2] sm:$0xf]  ;;  %v5901_v10 = vld [vmem:[#allocation2 + $0x374] sm:$0xf0] }
  0x3c   :  { %514 = vmatpush.bf16.msrb.mxu0 %v5776_v16  ;;  %v4313_v16 = vld [vmem:[#allocation2 + $0x128] sm:$0xf0]  ;;  %v4208_v22 = vor.u32 %v5802_v20, %v4207_v19  ;;  %v4519_v19 = vld [vmem:[#allocation2 + $0x258] sm:$0xf] }
  0x3d   :  { %527 = vmatpush.bf16.msrb.mxu1 %v5784_v17  ;;  %v4312_v17 = vor.u32 %v5827_v14, %v4311_v13  ;;  %v4316_v18 = vor.u32 %v5815_v15, %v4313_v16  ;;  %v4617_v13 = vld [vmem:[#allocation2 + $0x378] sm:$0xf0]  ;;  %v4511_v14 = vld [vmem:[#allocation2 + $0x250] sm:$0xf]  ;;  %v5877_v20 = vld [vmem:[#allocation2 + $0x2b4] sm:$0xf0] }
  0x3e   :  { %1747 = vmatpush.bf16.msrb.mxu2 %v4400_v27  ;;  %v5876_v15 = vld [vmem:[#allocation2 + $0x2ac] sm:$0xf0] }
  0x3f   :  { %1760 = vmatpush.bf16.msrb.mxu3 %v4404_v28  ;;  %v5791_v28 = vld [vmem:[#allocation2 + $0xc] sm:$0xf]  ;;  %v4512_v23 = vor.u32 %v5876_v15, %v4511_v14  ;;  %v5974_v14 = vld [vmem:[#allocation2 + $0x5bc] sm:$0xf0]  ;;  %v5962_v15 = vld [vmem:[#allocation2 + $0x564] sm:$0xf] }
  0x40   :  { %515 = vmatpush.bf16.msrb.mxu0 %v5775_v24  ;;  %v4215_v24 = vld [vmem:[#allocation2 + $0x8] sm:$0xf]  ;;  %v4220_v31 = vor.u32 %v5791_v28, %v4217_v29  ;;  %v5840_v28 = vld [vmem:[#allocation2 + $0x194] sm:$0xf] }
  0x41   :  { %528 = vmatpush.bf16.msrb.mxu1 %v5783_v25  ;;  %v5803_v25 = vld [vmem:[#allocation2 + $0x64] sm:$0xf0]  ;;  %v4417_v29 = vld [vmem:[#allocation2 + $0x1f0] sm:$0xf0] }
  0x42   :  { %1748 = vmatpush.bf16.msrb.mxu2 %v4304_v39  ;;  %v4216_v27 = vor.u32 %v5803_v25, %v4215_v24  ;;  %v5961_v39 = vld [vmem:[#allocation2 + $0x55c] sm:$0xf]  ;;  %v4415_v25 = vld [vmem:[#allocation2 + $0x190] sm:$0xf] }
  0x43   :  { %1761 = vmatpush.bf16.msrb.mxu3 %v4308_v40  ;;  %v4904_v40 = vor.u32 %v5973_v38, %v4903_v37  ;;  %v4428_v38 = vor.u32 %v5841_v33, %v4425_v34  ;;  %v5939_v33 = vld [vmem:[#allocation2 + $0x4ac] sm:$0xf] }
  0x44   :  { %516 = vmatpush.bf16.msrb.mxu0 %v5774_v41  ;;  %v4905_v41 = vld [vmem:[#allocation2 + $0x5b8] sm:$0xf0]  ;;  %v4825_v34 = vld [vmem:[#allocation2 + $0x508] sm:$0xf0] }
  0x45   :  { %529 = vmatpush.bf16.msrb.mxu1 %v5782_v42  ;;  %v4799_v42 = vld [vmem:[#allocation2 + $0x490] sm:$0xf] }
  0x46   :  { %1749 = vmatpush.bf16.msrb.mxu2 %v4208_v22  ;;  %v4521_v22 = vld [vmem:[#allocation2 + $0x2b8] sm:$0xf0] }
  0x47   :  { %517 = vmatmul.bf16.vlgmr.msrb.gmra.mxu0 %v161_v49  ;;  %1762 = vmatpush.bf16.msrb.mxu3 %v4212_v26  ;;  %v4804_v49 = vor.u32 %v5936_v46, %v4801_v47  ;;  %v4520_v26 = vor.u32 %v5877_v20, %v4519_v19  ;;  %v4524_v30 = vor.u32 %v5865_v21, %v4521_v22  ;;  %v5975_v19 = vld [vmem:[#allocation2 + $0x5c4] sm:$0xf0]  ;;  %v5963_v20 = vld [vmem:[#allocation2 + $0x56c] sm:$0xf] }
  0x48   :  { %1768 = vmatpush.bf16.msra.mxu0 %v4888_v43  ;;  %530 = vmatmul.bf16.vlgmr.msrb.gmra.mxu1 %v162_v50  ;;  %v5948_v43 = vld [vmem:[#allocation2 + $0x4ec] sm:$0xf0]  ;;  %v5949_v50 = vld [vmem:[#allocation2 + $0x4f4] sm:$0xf0]  ;;  %v4921_v21 = vld [vmem:[#allocation2 + $0x5c8] sm:$0xf0] }
  0x49   :  { %1781 = vmatpush.bf16.msra.mxu1 %v4892_v44  ;;  %v4908_v44 = vor.u32 %v5961_v39, %v4905_v41  ;;  %v4800_v45 = vor.u32 %v5948_v43, %v4799_v42  ;;  %v4808_v53 = vor.u32 %v5949_v50, %v4807_v48  ;;  %v4319_v39 = vld [vmem:[#allocation2 + $0xd0] sm:$0xf]  ;;  %v5816_v41 = vld [vmem:[#allocation2 + $0xd4] sm:$0xf]  ;;  %v5817_v48 = vld [vmem:[#allocation2 + $0xdc] sm:$0xf] }
  0x4a   :  { %1794 = vmatpush.bf16.msra.mxu2 %v4896_v35  ;;  %v4321_v43 = vld [vmem:[#allocation2 + $0x130] sm:$0xf0] }
  0x4b   :  { %1807 = vmatpush.bf16.msra.mxu3 %v4900_v36  ;;  %v4420_v36 = vor.u32 %v5840_v28, %v4417_v29  ;;  %v4324_v46 = vor.u32 %v5816_v41, %v4321_v43  ;;  %v4924_v28 = vor.u32 %v5963_v20, %v4921_v21  ;;  %v5938_v29 = vld [vmem:[#allocation2 + $0x4a4] sm:$0xf]  ;;  %v4441_v20 = vld [vmem:[#allocation2 + $0x208] sm:$0xf0] }
  0x4c   :  { %1769 = vmatpush.bf16.msra.mxu0 %v4792_v51  ;;  %v5937_v51 = vld [vmem:[#allocation2 + $0x49c] sm:$0xf]  ;;  %v5914_v43 = vld [vmem:[#allocation2 + $0x3e4] sm:$0xf] }
  0x4d   :  { %1782 = vmatpush.bf16.msra.mxu1 %v4796_v52  ;;  %v4809_v52 = vld [vmem:[#allocation2 + $0x4f8] sm:$0xf0] }
  0x4e   :  { %v4812_v54 = vor.u32 %v5937_v51, %v4809_v52  ;;  %1795 = vmatpush.bf16.msra.mxu2 %v4800_v45  ;;  %v5829_v45 = vld [vmem:[#allocation2 + $0x134] sm:$0xf0] }
  0x4f   :  { %1808 = vmatpush.bf16.msra.mxu3 %v4804_v49  ;;  %v4329_v49 = vld [vmem:[#allocation2 + $0x138] sm:$0xf0] }
  0x50   :  { %1770 = vmatpush.bf16.msra.mxu0 %v4696_v57  ;;  %v5912_v57 = vld [vmem:[#allocation2 + $0x3d4] sm:$0xf]  ;;  %v4332_v50 = vor.u32 %v5817_v48, %v4329_v49  ;;  %v4729_v48 = vld [vmem:[#allocation2 + $0x448] sm:$0xf0] }
  0x51   :  { %1783 = vmatpush.bf16.msra.mxu1 %v4700_v58  ;;  %v4704_v58 = vor.u32 %v5924_v56, %v4703_v55  ;;  %v4708_v62 = vor.u32 %v5912_v57, %v4705_v59  ;;  %v5792_v55 = vld [vmem:[#allocation2 + $0x14] sm:$0xf]  ;;  %v5805_v59 = vld [vmem:[#allocation2 + $0x74] sm:$0xf0] }
  0x52   :  { %v4225_v57 = vld [vmem:[#allocation2 + $0x70] sm:$0xf0] }
  0x53   :  { %1796 = vmatpush.bf16.msra.mxu2 %v4704_v58  ;;  %1809 = vmatpush.bf16.msra.mxu3 %v4708_v62  ;;  %v4231_v58 = vld [vmem:[#allocation2 + $0x18] sm:$0xf]  ;;  %v5793_v62 = vld [vmem:[#allocation2 + $0x1c] sm:$0xf] }
  0x54   :  { %1771 = vmatpush.bf16.msra.mxu0 %v4600_v63  ;;  %v4712_v63 = vor.u32 %v5925_v61, %v4711_v60  ;;  %v4228_v60 = vor.u32 %v5792_v55, %v4225_v57  ;;  %v4232_v61 = vor.u32 %v5805_v59, %v4231_v58  ;;  %v5890_v55 = vld [vmem:[#allocation2 + $0x324] sm:$0xf]  ;;  %v4631_v57 = vld [vmem:[#allocation2 + $0x328] sm:$0xf]  ;;  %v5891_v59 = vld [vmem:[#allocation2 + $0x32c] sm:$0xf] }
  0x55   :  { %1784 = vmatpush.bf16.msra.mxu1 %v4604_v0  ;;  %v5913_v0 = vld [vmem:[#allocation2 + $0x3dc] sm:$0xf]  ;;  %v5903_v58 = vld [vmem:[#allocation2 + $0x384] sm:$0xf0] }
  0x56   :  { %v4716_v3 = vor.u32 %v5913_v0, %v4713_v1 }
  0x57   :  { %1797 = vmatpush.bf16.msra.mxu2 %v4608_v7 }
  0x58   :  { %1772 = vmatpush.bf16.msra.mxu0 %v4504_v5  ;;  %v5888_v5 = vld [vmem:[#allocation2 + $0x314] sm:$0xf] }
  0x59   :  { %1785 = vmatpush.bf16.msra.mxu1 %v4508_v6  ;;  %v4609_v6 = vld [vmem:[#allocation2 + $0x370] sm:$0xf0] }
  0x5a   :  { %v4612_v8 = vor.u32 %v5888_v5, %v4609_v6 }
  0x5b   :  { %1798 = vmatpush.bf16.msra.mxu2 %v4512_v23 }
  0x5c   :  { %1773 = vmatpush.bf16.msra.mxu0 %v4408_v11  ;;  %v5889_v11 = vld [vmem:[#allocation2 + $0x31c] sm:$0xf]  ;;  %1810 = vmatpush.bf16.msra.mxu3 %v4612_v8 }
  0x5d   :  { %1786 = vmatpush.bf16.msra.mxu1 %v4412_v12  ;;  %v4616_v12 = vor.u32 %v5901_v10, %v4615_v9  ;;  %v4620_v16 = vor.u32 %v5889_v11, %v4617_v13  ;;  %v4911_v13 = vld [vmem:[#allocation2 + $0x560] sm:$0xf] }
  0x5e   :  { %v4912_v23 = vor.u32 %v5974_v14, %v4911_v13 }
  0x60   :  { %1774 = vmatpush.bf16.msra.mxu0 %v4312_v17  ;;  %v5864_v17 = vld [vmem:[#allocation2 + $0x254] sm:$0xf] }
  0x61   :  { %1787 = vmatpush.bf16.msra.mxu1 %v4316_v18  ;;  %v4513_v18 = vld [vmem:[#allocation2 + $0x2b0] sm:$0xf0] }
  0x62   :  { %v4516_v24 = vor.u32 %v5864_v17, %v4513_v18  ;;  %v4919_v17 = vld [vmem:[#allocation2 + $0x568] sm:$0xf] }
  0x64   :  { %1775 = vmatpush.bf16.msra.mxu0 %v4216_v27  ;;  %v5852_v27 = vld [vmem:[#allocation2 + $0x1ec] sm:$0xf0]  ;;  %1811 = vmatpush.bf16.msra.mxu3 %v4516_v24 }
  0x65   :  { %1788 = vmatpush.bf16.msra.mxu1 %v4220_v31  ;;  %v4423_v31 = vld [vmem:[#allocation2 + $0x198] sm:$0xf]  ;;  %v4416_v35 = vor.u32 %v5852_v27, %v4415_v25  ;;  %v4815_v25 = vld [vmem:[#allocation2 + $0x4a0] sm:$0xf]  ;;  %v4920_v27 = vor.u32 %v5975_v19, %v4919_v17  ;;  %v4439_v17 = vld [vmem:[#allocation2 + $0x1a8] sm:$0xf] }
  0x66   :  { %v4424_v37 = vor.u32 %v5853_v32, %v4423_v31  ;;  %v4823_v31 = vld [vmem:[#allocation2 + $0x4a8] sm:$0xf]  ;;  %v5843_v19 = vld [vmem:[#allocation2 + $0x1ac] sm:$0xf] }
  0x67   :  { %1799 = vmatpush.bf16.msra.mxu2 %v4416_v35  ;;  %v5951_v32 = vld [vmem:[#allocation2 + $0x504] sm:$0xf0] }
  0x68   :  { %1820 = vmatpush.bf16.msrb.mxu0 %v4904_v40  ;;  %1812 = vmatpush.bf16.msra.mxu3 %v4420_v36  ;;  %v5828_v40 = vld [vmem:[#allocation2 + $0x12c] sm:$0xf0]  ;;  %v4824_v41 = vor.u32 %v5951_v32, %v4823_v31  ;;  %v5831_v31 = vld [vmem:[#allocation2 + $0x144] sm:$0xf0]  ;;  %v5819_v32 = vld [vmem:[#allocation2 + $0xec] sm:$0xf] }
  0x69   :  { %1833 = vmatpush.bf16.msrb.mxu1 %v4908_v44  ;;  %v4320_v42 = vor.u32 %v5828_v40, %v4319_v39  ;;  %v4327_v44 = vld [vmem:[#allocation2 + $0xd8] sm:$0xf]  ;;  %v4719_v39 = vld [vmem:[#allocation2 + $0x3e0] sm:$0xf] }
  0x6a   :  { %v4328_v47 = vor.u32 %v5829_v45, %v4327_v44  ;;  %v5926_v40 = vld [vmem:[#allocation2 + $0x43c] sm:$0xf0]  ;;  %v4721_v44 = vld [vmem:[#allocation2 + $0x440] sm:$0xf0]  ;;  %v4727_v45 = vld [vmem:[#allocation2 + $0x3e8] sm:$0xf] }
  0x6b   :  { %1800 = vmatpush.bf16.msra.mxu2 %v4320_v42  ;;  %v4828_v42 = vor.u32 %v5939_v33, %v4825_v34  ;;  %v4720_v49 = vor.u32 %v5926_v40, %v4719_v39  ;;  %v4345_v33 = vld [vmem:[#allocation2 + $0x148] sm:$0xf0]  ;;  %v4239_v34 = vld [vmem:[#allocation2 + $0x20] sm:$0xf]  ;;  %v4241_v39 = vld [vmem:[#allocation2 + $0x80] sm:$0xf0] }
  0x6c   :  { %1821 = vmatpush.bf16.msrb.mxu0 %v4808_v53  ;;  %1813 = vmatpush.bf16.msra.mxu3 %v4324_v46  ;;  %v4223_v53 = vld [vmem:[#allocation2 + $0x10] sm:$0xf]  ;;  %v5927_v46 = vld [vmem:[#allocation2 + $0x444] sm:$0xf0] }
  0x6d   :  { %1834 = vmatpush.bf16.msrb.mxu1 %v4812_v54  ;;  %v5804_v54 = vld [vmem:[#allocation2 + $0x6c] sm:$0xf0] }
  0x6e   :  { %v4224_v56 = vor.u32 %v5804_v54, %v4223_v53  ;;  %v4728_v53 = vor.u32 %v5927_v46, %v4727_v45  ;;  %v4249_v45 = vld [vmem:[#allocation2 + $0x88] sm:$0xf0]  ;;  %v4927_v46 = vld [vmem:[#allocation2 + $0x570] sm:$0xf] }
  0x70   :  { %1822 = vmatpush.bf16.msrb.mxu0 %v4712_v63  ;;  %v4233_v63 = vld [vmem:[#allocation2 + $0x78] sm:$0xf0]  ;;  %1801 = vmatpush.bf16.msra.mxu2 %v4224_v56  ;;  %v4625_v56 = vld [vmem:[#allocation2 + $0x380] sm:$0xf0] }
  0x71   :  { %1835 = vmatpush.bf16.msrb.mxu1 %v4716_v3  ;;  %v4236_v0 = vor.u32 %v5793_v62, %v4233_v63  ;;  %1814 = vmatpush.bf16.msra.mxu3 %v4228_v60  ;;  %v4633_v60 = vld [vmem:[#allocation2 + $0x388] sm:$0xf0]  ;;  %v4628_v62 = vor.u32 %v5890_v55, %v4625_v56  ;;  %v4527_v63 = vld [vmem:[#allocation2 + $0x260] sm:$0xf]  ;;  %v4937_v55 = vld [vmem:[#allocation2 + $0x5d8] sm:$0xf0] }
  0x74   :  { %1823 = vmatpush.bf16.msrb.mxu0 %v4616_v12 }
  0x75   :  { %1836 = vmatpush.bf16.msrb.mxu1 %v4620_v16  ;;  %v4913_v16 = vld [vmem:[#allocation2 + $0x5c0] sm:$0xf0] }
  0x76   :  { %v4916_v24 = vor.u32 %v5962_v15, %v4913_v16  ;;  %v5842_v15 = vld [vmem:[#allocation2 + $0x1a4] sm:$0xf] }
  0x77   :  { %v4433_v16 = vld [vmem:[#allocation2 + $0x200] sm:$0xf0] }
  0x78   :  { %1824 = vmatpush.bf16.msrb.mxu0 %v4520_v26  ;;  %v5950_v26 = vld [vmem:[#allocation2 + $0x4fc] sm:$0xf0] }
  0x79   :  { %1837 = vmatpush.bf16.msrb.mxu1 %v4524_v30  ;;  %v4817_v30 = vld [vmem:[#allocation2 + $0x500] sm:$0xf0] }
  0x7c   :  { %1825 = vmatpush.bf16.msrb.mxu0 %v4424_v37  ;;  %v4816_v37 = vor.u32 %v5950_v26, %v4815_v25  ;;  %v5830_v25 = vld [vmem:[#allocation2 + $0x13c] sm:$0xf0] }
  0x7d   :  { %1838 = vmatpush.bf16.msrb.mxu1 %v4428_v38  ;;  %v4820_v38 = vor.u32 %v5938_v29, %v4817_v30  ;;  %v4337_v29 = vld [vmem:[#allocation2 + $0x140] sm:$0xf0]  ;;  %v4343_v30 = vld [vmem:[#allocation2 + $0xe8] sm:$0xf] }
  0x7e   :  { %v4344_v40 = vor.u32 %v5831_v31, %v4343_v30  ;;  %v4649_v30 = vld [vmem:[#allocation2 + $0x398] sm:$0xf0] }
  0x80   :  { %1826 = vmatpush.bf16.msrb.mxu0 %v4328_v47  ;;  %v5915_v47 = vld [vmem:[#allocation2 + $0x3ec] sm:$0xf] }
  0x81   :  { %1839 = vmatpush.bf16.msrb.mxu1 %v4332_v50  ;;  %v4724_v50 = vor.u32 %v5914_v43, %v4721_v44  ;;  %v4732_v54 = vor.u32 %v5915_v47, %v4729_v48  ;;  %v5807_v43 = vld [vmem:[#allocation2 + $0x84] sm:$0xf0]  ;;  %v5795_v44 = vld [vmem:[#allocation2 + $0x2c] sm:$0xf]  ;;  %v5976_v47 = vld [vmem:[#allocation2 + $0x5cc] sm:$0xf0] }
  0x82   :  { %v5964_v48 = vld [vmem:[#allocation2 + $0x574] sm:$0xf] }
  0x84   :  { %1827 = vmatpush.bf16.msrb.mxu0 %v4232_v61 }
  0x85   :  { %1840 = vmatpush.bf16.msrb.mxu1 %v4236_v0  ;;  %v5878_v0 = vld [vmem:[#allocation2 + $0x2bc] sm:$0xf0] }
  0xa4   :  { %v466_v51 = vpop.f32.mrf.mxu0 }
  0xa5   :  { %v479_v52 = vpop.f32.mrf.mxu1 }
  0xa6   :  { %v480_v7 = vadd.f32 %v479_v52, %v466_v51  ;;  %v4623_v51 = vld [vmem:[#allocation2 + $0x320] sm:$0xf] }
  0xa7   :  { %v5902_v52 = vld [vmem:[#allocation2 + $0x37c] sm:$0xf0] }
  0xa8   :  { %v4624_v61 = vor.u32 %v5902_v52, %v4623_v51 }
  0xac   :  { %v468_v1 = vpop.f32.mrf.mxu0  ;;  %v492_v3 = vpop.f32.mrf.mxu2 }
  0xad   :  { %v481_v2 = vpop.f32.mrf.mxu1  ;;  %v505_v4 = vpop.f32.mrf.mxu3  ;;  %v493_v8 = vadd.f32 %v492_v3, %v480_v7  ;;  %v4632_v1 = vor.u32 %v5903_v58, %v4631_v57  ;;  %v5866_v3 = vld [vmem:[#allocation2 + $0x264] sm:$0xf]  ;;  %v5867_v7 = vld [vmem:[#allocation2 + $0x26c] sm:$0xf]  ;;  %v4252_v57 = vor.u32 %v5795_v44, %v4249_v45  ;;  %v4928_v58 = vor.u32 %v5976_v47, %v4927_v46  ;;  %v4447_v45 = vld [vmem:[#allocation2 + $0x1b0] sm:$0xf] }
  0xae   :  { %v4636_v2 = vor.u32 %v5891_v59, %v4633_v60  ;;  %v4831_v60 = vld [vmem:[#allocation2 + $0x4b0] sm:$0xf] }
  0xaf   :  { %v506_v9 = vadd.f32 %v505_v4, %v493_v8  ;;  %v4529_v4 = vld [vmem:[#allocation2 + $0x2c0] sm:$0xf0]  ;;  %v4537_v8 = vld [vmem:[#allocation2 + $0x2c8] sm:$0xf0]  ;;  %v5856_v46 = vld [vmem:[#allocation2 + $0x20c] sm:$0xf0] }
  0xb0   :  { %v4540_v14 = vor.u32 %v5867_v7, %v4537_v8  ;;  %v4735_v8 = vld [vmem:[#allocation2 + $0x3f0] sm:$0xf] }
  0xb4   :  { %v494_v5 = vpop.f32.mrf.mxu2 }
  0xb5   :  { %v507_v6 = vpop.f32.mrf.mxu3  ;;  %v4535_v5 = vld [vmem:[#allocation2 + $0x268] sm:$0xf] }
  0xb6   :  { %v5879_v6 = vld [vmem:[#allocation2 + $0x2c4] sm:$0xf0] }
  0xb7   :  { %v4536_v13 = vor.u32 %v5879_v6, %v4535_v5  ;;  %v4841_v5 = vld [vmem:[#allocation2 + $0x518] sm:$0xf0] }
  0xc4   :  { %v518_v10 = vpop.f32.mrf.mxu0 }
  0xc5   :  { %v531_v11 = vpop.f32.mrf.mxu1  ;;  %v519_v12 = vadd.f32 %v518_v10, %v506_v9  ;;  %v4528_v9 = vor.u32 %v5878_v0, %v4527_v63  ;;  %v4532_v10 = vor.u32 %v5866_v3, %v4529_v4  ;;  %v5940_v0 = vld [vmem:[#allocation2 + $0x4b4] sm:$0xf]  ;;  %v5953_v3 = vld [vmem:[#allocation2 + $0x514] sm:$0xf0]  ;;  %v5941_v4 = vld [vmem:[#allocation2 + $0x4bc] sm:$0xf] }
  0xc7   :  { %v532_v18 = vadd.f32 %v531_v11, %v519_v12  ;;  %v4431_v11 = vld [vmem:[#allocation2 + $0x1a0] sm:$0xf] }
  0xc8   :  { %v5854_v12 = vld [vmem:[#allocation2 + $0x1fc] sm:$0xf0] }
  0xc9   :  { %v6474_v22 = vpack.c.bf16 %v532_v18, %v532_v18  ;;  %v5855_v18 = vld [vmem:[#allocation2 + $0x204] sm:$0xf0]  ;;  %v4432_v21 = vor.u32 %v5854_v12, %v4431_v11  ;;  %v4844_v11 = vor.u32 %v5941_v4, %v4841_v5  ;;  %v5916_v12 = vld [vmem:[#allocation2 + $0x3f4] sm:$0xf] }
  0xca   :  { %v4440_v26 = vor.u32 %v5855_v18, %v4439_v17  ;;  %v4745_v17 = vld [vmem:[#allocation2 + $0x458] sm:$0xf0] }
  0xcb   :  { %1750 = vmatmul.bf16.vlgmr.msrb.gmra.mxu2 %v6474_v22  ;;  %1763 = vmatmul.bf16.vlgmr.msrb.gmra.mxu3 %v6474_v22 }
  0xcc   :  { %1776 = vmatmul.bf16.vlgmr.msra.gmra.mxu0 %v6474_v22  ;;  %1789 = vmatmul.bf16.vlgmr.msra.gmra.mxu1 %v6474_v22  ;;  %v520_v35 = vpop.f32.mrf.mxu0 }
  0xcd   :  { %v533_v36 = vpop.f32.mrf.mxu1  ;;  %1846 = vmatpush.bf16.msrb.mxu2 %v4912_v23  ;;  %1859 = vmatpush.bf16.msrb.mxu3 %v4916_v24  ;;  %v4436_v23 = vor.u32 %v5842_v15, %v4433_v16  ;;  %v4335_v24 = vld [vmem:[#allocation2 + $0xe0] sm:$0xf]  ;;  %v5929_v15 = vld [vmem:[#allocation2 + $0x454] sm:$0xf0]  ;;  %v5917_v16 = vld [vmem:[#allocation2 + $0x3fc] sm:$0xf] }
  0xce   :  { %1872 = vmatpush.bf16.msra.mxu0 %v4920_v27  ;;  %1885 = vmatpush.bf16.msra.mxu1 %v4924_v28  ;;  %v4444_v27 = vor.u32 %v5843_v19, %v4441_v20  ;;  %v5818_v28 = vld [vmem:[#allocation2 + $0xe4] sm:$0xf]  ;;  %v4336_v35 = vor.u32 %v5830_v25, %v4335_v24  ;;  %v4639_v20 = vld [vmem:[#allocation2 + $0x330] sm:$0xf]  ;;  %v4748_v24 = vor.u32 %v5917_v16, %v4745_v17  ;;  %v5892_v25 = vld [vmem:[#allocation2 + $0x334] sm:$0xf] }
  0xcf   :  { %v4340_v36 = vor.u32 %v5818_v28, %v4337_v29  ;;  %v5905_v28 = vld [vmem:[#allocation2 + $0x394] sm:$0xf0]  ;;  %v5893_v29 = vld [vmem:[#allocation2 + $0x33c] sm:$0xf]  ;;  %v5978_v16 = vld [vmem:[#allocation2 + $0x5dc] sm:$0xf0] }
  0xd0   :  { %v5966_v17 = vld [vmem:[#allocation2 + $0x584] sm:$0xf] }
  0xd1   :  { %1847 = vmatpush.bf16.msrb.mxu2 %v4816_v37  ;;  %1860 = vmatpush.bf16.msrb.mxu3 %v4820_v38  ;;  %v5806_v37 = vld [vmem:[#allocation2 + $0x7c] sm:$0xf0]  ;;  %v5794_v38 = vld [vmem:[#allocation2 + $0x24] sm:$0xf] }
  0xd2   :  { %1873 = vmatpush.bf16.msra.mxu0 %v4824_v41  ;;  %1886 = vmatpush.bf16.msra.mxu1 %v4828_v42  ;;  %v4348_v41 = vor.u32 %v5819_v32, %v4345_v33  ;;  %v4247_v42 = vld [vmem:[#allocation2 + $0x28] sm:$0xf]  ;;  %v4240_v51 = vor.u32 %v5806_v37, %v4239_v34  ;;  %v4244_v52 = vor.u32 %v5794_v38, %v4241_v39  ;;  %v4543_v33 = vld [vmem:[#allocation2 + $0x270] sm:$0xf]  ;;  %v5868_v37 = vld [vmem:[#allocation2 + $0x274] sm:$0xf] }
  0xd3   :  { %v4248_v56 = vor.u32 %v5807_v43, %v4247_v42  ;;  %v5880_v34 = vld [vmem:[#allocation2 + $0x2cc] sm:$0xf0]  ;;  %v4545_v38 = vld [vmem:[#allocation2 + $0x2d0] sm:$0xf0]  ;;  %v4551_v39 = vld [vmem:[#allocation2 + $0x278] sm:$0xf] }
  0xd4   :  { %v4553_v42 = vld [vmem:[#allocation2 + $0x2d8] sm:$0xf0]  ;;  %v4544_v43 = vor.u32 %v5880_v34, %v4543_v33  ;;  %v4548_v44 = vor.u32 %v5868_v37, %v4545_v38  ;;  %v5942_v34 = vld [vmem:[#allocation2 + $0x4c4] sm:$0xf]  ;;  %v5955_v37 = vld [vmem:[#allocation2 + $0x524] sm:$0xf0] }
  0xd5   :  { %1848 = vmatpush.bf16.msrb.mxu2 %v4720_v49  ;;  %1861 = vmatpush.bf16.msrb.mxu3 %v4724_v50  ;;  %v4929_v49 = vld [vmem:[#allocation2 + $0x5d0] sm:$0xf0]  ;;  %v4935_v50 = vld [vmem:[#allocation2 + $0x578] sm:$0xf]  ;;  %v5943_v38 = vld [vmem:[#allocation2 + $0x4cc] sm:$0xf] }
  0xd6   :  { %1874 = vmatpush.bf16.msra.mxu0 %v4728_v53  ;;  %1887 = vmatpush.bf16.msra.mxu1 %v4732_v54  ;;  %v5977_v53 = vld [vmem:[#allocation2 + $0x5d4] sm:$0xf0]  ;;  %v5965_v54 = vld [vmem:[#allocation2 + $0x57c] sm:$0xf]  ;;  %v4932_v59 = vor.u32 %v5964_v48, %v4929_v49  ;;  %v5844_v49 = vld [vmem:[#allocation2 + $0x1b4] sm:$0xf] }
  0xd7   :  { %v4940_v63 = vor.u32 %v5965_v54, %v4937_v55  ;;  %v4457_v54 = vld [vmem:[#allocation2 + $0x218] sm:$0xf0]  ;;  %v4448_v55 = vor.u32 %v5856_v46, %v4447_v45  ;;  %v5918_v46 = vld [vmem:[#allocation2 + $0x404] sm:$0xf] }
  0xd9   :  { %1849 = vmatpush.bf16.msrb.mxu2 %v4624_v61  ;;  %1862 = vmatpush.bf16.msrb.mxu3 %v4628_v62  ;;  %v5952_v61 = vld [vmem:[#allocation2 + $0x50c] sm:$0xf0]  ;;  %v4936_v62 = vor.u32 %v5977_v53, %v4935_v50  ;;  %v4449_v50 = vld [vmem:[#allocation2 + $0x210] sm:$0xf0]  ;;  %v5845_v53 = vld [vmem:[#allocation2 + $0x1bc] sm:$0xf] }
  0xda   :  { %1875 = vmatpush.bf16.msra.mxu0 %v4632_v1  ;;  %1888 = vmatpush.bf16.msra.mxu1 %v4636_v2  ;;  %v4833_v1 = vld [vmem:[#allocation2 + $0x510] sm:$0xf0]  ;;  %v4839_v2 = vld [vmem:[#allocation2 + $0x4b8] sm:$0xf]  ;;  %v4832_v6 = vor.u32 %v5952_v61, %v4831_v60  ;;  %v4460_v60 = vor.u32 %v5845_v53, %v4457_v54  ;;  %v4655_v54 = vld [vmem:[#allocation2 + $0x340] sm:$0xf] }
  0xdb   :  { %1802 = vmatmul.bf16.vlgmr.msra.gmra.mxu2 %v6474_v22  ;;  %1815 = vmatmul.bf16.vlgmr.msra.gmra.mxu3 %v6474_v22  ;;  %v4836_v7 = vor.u32 %v5940_v0, %v4833_v1  ;;  %v5820_v61 = vld [vmem:[#allocation2 + $0xf4] sm:$0xf]  ;;  %v5833_v0 = vld [vmem:[#allocation2 + $0x154] sm:$0xf0]  ;;  %v5821_v1 = vld [vmem:[#allocation2 + $0xfc] sm:$0xf] }
  0xdc   :  { %1828 = vmatmul.bf16.vlgmr.msrb.gmra.mxu0 %v6474_v22  ;;  %1841 = vmatmul.bf16.vlgmr.msrb.gmra.mxu1 %v6474_v22 }
  0xdd   :  { %1850 = vmatpush.bf16.msrb.mxu2 %v4528_v9  ;;  %1863 = vmatpush.bf16.msrb.mxu3 %v4532_v10  ;;  %v5928_v9 = vld [vmem:[#allocation2 + $0x44c] sm:$0xf0]  ;;  %v4840_v10 = vor.u32 %v5953_v3, %v4839_v2  ;;  %v4361_v2 = vld [vmem:[#allocation2 + $0x158] sm:$0xf0] }
  0xde   :  { %1876 = vmatpush.bf16.msra.mxu0 %v4536_v13  ;;  %1889 = vmatpush.bf16.msra.mxu1 %v4540_v14  ;;  %v4737_v13 = vld [vmem:[#allocation2 + $0x450] sm:$0xf0]  ;;  %v4743_v14 = vld [vmem:[#allocation2 + $0x3f8] sm:$0xf]  ;;  %v4736_v18 = vor.u32 %v5928_v9, %v4735_v8  ;;  %v4255_v3 = vld [vmem:[#allocation2 + $0x30] sm:$0xf] }
  0xdf   :  { %v4740_v19 = vor.u32 %v5916_v12, %v4737_v13  ;;  %v4257_v8 = vld [vmem:[#allocation2 + $0x90] sm:$0xf0]  ;;  %v5809_v12 = vld [vmem:[#allocation2 + $0x94] sm:$0xf0]  ;;  %v5797_v13 = vld [vmem:[#allocation2 + $0x3c] sm:$0xf] }
  0xe1   :  { %1851 = vmatpush.bf16.msrb.mxu2 %v4432_v21  ;;  %1864 = vmatpush.bf16.msrb.mxu3 %v4436_v23  ;;  %v5904_v21 = vld [vmem:[#allocation2 + $0x38c] sm:$0xf0]  ;;  %v4744_v23 = vor.u32 %v5929_v15, %v4743_v14  ;;  %v4265_v14 = vld [vmem:[#allocation2 + $0x98] sm:$0xf0]  ;;  %v4943_v15 = vld [vmem:[#allocation2 + $0x580] sm:$0xf] }
  0xe2   :  { %1877 = vmatpush.bf16.msra.mxu0 %v4440_v26  ;;  %1890 = vmatpush.bf16.msra.mxu1 %v4444_v27  ;;  %v4641_v26 = vld [vmem:[#allocation2 + $0x390] sm:$0xf0]  ;;  %v4647_v27 = vld [vmem:[#allocation2 + $0x338] sm:$0xf]  ;;  %v4640_v31 = vor.u32 %v5904_v21, %v4639_v20 }
  0xe3   :  { %v4644_v32 = vor.u32 %v5892_v25, %v4641_v26  ;;  %v4953_v25 = vld [vmem:[#allocation2 + $0x5e8] sm:$0xf0] }
  0xe5   :  { %1852 = vmatpush.bf16.msrb.mxu2 %v4336_v35  ;;  %1865 = vmatpush.bf16.msrb.mxu3 %v4340_v36  ;;  %v4648_v35 = vor.u32 %v5905_v28, %v4647_v27  ;;  %v4652_v36 = vor.u32 %v5893_v29, %v4649_v30  ;;  %v4268_v27 = vor.u32 %v5797_v13, %v4265_v14  ;;  %v4847_v30 = vld [vmem:[#allocation2 + $0x4c0] sm:$0xf] }
  0xe6   :  { %1878 = vmatpush.bf16.msra.mxu0 %v4344_v40  ;;  %1891 = vmatpush.bf16.msra.mxu1 %v4348_v41  ;;  %v5881_v40 = vld [vmem:[#allocation2 + $0x2d4] sm:$0xf0]  ;;  %v5869_v41 = vld [vmem:[#allocation2 + $0x27c] sm:$0xf]  ;;  %v4944_v28 = vor.u32 %v5978_v16, %v4943_v15  ;;  %v4463_v14 = vld [vmem:[#allocation2 + $0x1c0] sm:$0xf] }
  0xe7   :  { %v4552_v47 = vor.u32 %v5881_v40, %v4551_v39  ;;  %v4556_v48 = vor.u32 %v5869_v41, %v4553_v42  ;;  %v4857_v39 = vld [vmem:[#allocation2 + $0x528] sm:$0xf0]  ;;  %v4751_v42 = vld [vmem:[#allocation2 + $0x400] sm:$0xf] }
  0xe8   :  { %v4860_v45 = vor.u32 %v5943_v38, %v4857_v39  ;;  %v5858_v15 = vld [vmem:[#allocation2 + $0x21c] sm:$0xf0] }
  0xe9   :  { %1853 = vmatpush.bf16.msrb.mxu2 %v4240_v51  ;;  %1866 = vmatpush.bf16.msrb.mxu3 %v4244_v52  ;;  %v4455_v51 = vld [vmem:[#allocation2 + $0x1b8] sm:$0xf] }
  0xea   :  { %1879 = vmatpush.bf16.msra.mxu0 %v4248_v56  ;;  %1892 = vmatpush.bf16.msra.mxu1 %v4252_v57  ;;  %v5857_v52 = vld [vmem:[#allocation2 + $0x214] sm:$0xf0]  ;;  %v4452_v56 = vor.u32 %v5844_v49, %v4449_v50  ;;  %v4351_v57 = vld [vmem:[#allocation2 + $0xf0] sm:$0xf]  ;;  %v5931_v49 = vld [vmem:[#allocation2 + $0x464] sm:$0xf0] }
  0xeb   :  { %v5919_v50 = vld [vmem:[#allocation2 + $0x40c] sm:$0xf] }
  0xec   :  { %1854 = vmatmul.bf16.vlgmr.msrb.gmra.mxu2 %v6474_v22  ;;  %1867 = vmatmul.bf16.vlgmr.msrb.gmra.mxu3 %v6474_v22 }
  0xed   :  { %1898 = vmatpush.bf16.msra.mxu2 %v4928_v58  ;;  %1911 = vmatpush.bf16.msra.mxu3 %v4932_v59  ;;  %v5832_v58 = vld [vmem:[#allocation2 + $0x14c] sm:$0xf0]  ;;  %v4456_v59 = vor.u32 %v5857_v52, %v4455_v51  ;;  %v4761_v51 = vld [vmem:[#allocation2 + $0x468] sm:$0xf0] }
  0xee   :  { %1924 = vmatpush.bf16.msrb.mxu0 %v4936_v62  ;;  %1937 = vmatpush.bf16.msrb.mxu1 %v4940_v63  ;;  %v4353_v62 = vld [vmem:[#allocation2 + $0x150] sm:$0xf0]  ;;  %v4359_v63 = vld [vmem:[#allocation2 + $0xf8] sm:$0xf]  ;;  %v4352_v4 = vor.u32 %v5832_v58, %v4351_v57  ;;  %v4764_v57 = vor.u32 %v5919_v50, %v4761_v51  ;;  %v5894_v58 = vld [vmem:[#allocation2 + $0x344] sm:$0xf] }
  0xef   :  { %1880 = vmatmul.bf16.vlgmr.msra.gmra.mxu0 %v6474_v22  ;;  %1893 = vmatmul.bf16.vlgmr.msra.gmra.mxu1 %v6474_v22  ;;  %v4356_v5 = vor.u32 %v5820_v61, %v4353_v62  ;;  %v4360_v9 = vor.u32 %v5833_v0, %v4359_v63  ;;  %v5907_v61 = vld [vmem:[#allocation2 + $0x3a4] sm:$0xf0]  ;;  %v5895_v62 = vld [vmem:[#allocation2 + $0x34c] sm:$0xf]  ;;  %v5980_v50 = vld [vmem:[#allocation2 + $0x5ec] sm:$0xf0] }
  0xf0   :  { %v4665_v63 = vld [vmem:[#allocation2 + $0x3a8] sm:$0xf0]  ;;  %v5968_v51 = vld [vmem:[#allocation2 + $0x594] sm:$0xf] }
  0xf1   :  { %1899 = vmatpush.bf16.msra.mxu2 %v4832_v6  ;;  %1912 = vmatpush.bf16.msra.mxu3 %v4836_v7  ;;  %v5808_v6 = vld [vmem:[#allocation2 + $0x8c] sm:$0xf0]  ;;  %v5796_v7 = vld [vmem:[#allocation2 + $0x34] sm:$0xf] }
  0xf2   :  { %1925 = vmatpush.bf16.msrb.mxu0 %v4840_v10  ;;  %1938 = vmatpush.bf16.msrb.mxu1 %v4844_v11  ;;  %v4364_v10 = vor.u32 %v5821_v1, %v4361_v2  ;;  %v4263_v11 = vld [vmem:[#allocation2 + $0x38] sm:$0xf]  ;;  %v4256_v20 = vor.u32 %v5808_v6, %v4255_v3  ;;  %v4260_v21 = vor.u32 %v5796_v7, %v4257_v8  ;;  %v4559_v2 = vld [vmem:[#allocation2 + $0x280] sm:$0xf]  ;;  %v5870_v6 = vld [vmem:[#allocation2 + $0x284] sm:$0xf] }
  0xf3   :  { %v4264_v26 = vor.u32 %v5809_v12, %v4263_v11  ;;  %v5882_v3 = vld [vmem:[#allocation2 + $0x2dc] sm:$0xf0]  ;;  %v4561_v7 = vld [vmem:[#allocation2 + $0x2e0] sm:$0xf0]  ;;  %v4567_v8 = vld [vmem:[#allocation2 + $0x288] sm:$0xf] }
  0xf4   :  { %v4569_v11 = vld [vmem:[#allocation2 + $0x2e8] sm:$0xf0]  ;;  %v4560_v12 = vor.u32 %v5882_v3, %v4559_v2  ;;  %v4564_v13 = vor.u32 %v5870_v6, %v4561_v7  ;;  %v5944_v3 = vld [vmem:[#allocation2 + $0x4d4] sm:$0xf]  ;;  %v5957_v6 = vld [vmem:[#allocation2 + $0x534] sm:$0xf0] }
  0xf5   :  { %1900 = vmatpush.bf16.msra.mxu2 %v4736_v18  ;;  %1913 = vmatpush.bf16.msra.mxu3 %v4740_v19  ;;  %v4945_v18 = vld [vmem:[#allocation2 + $0x5e0] sm:$0xf0]  ;;  %v4951_v19 = vld [vmem:[#allocation2 + $0x588] sm:$0xf]  ;;  %v5945_v7 = vld [vmem:[#allocation2 + $0x4dc] sm:$0xf] }
  0xf6   :  { %1926 = vmatpush.bf16.msrb.mxu0 %v4744_v23  ;;  %1939 = vmatpush.bf16.msrb.mxu1 %v4748_v24  ;;  %v5979_v23 = vld [vmem:[#allocation2 + $0x5e4] sm:$0xf0]  ;;  %v5967_v24 = vld [vmem:[#allocation2 + $0x58c] sm:$0xf]  ;;  %v4948_v29 = vor.u32 %v5966_v17, %v4945_v18  ;;  %v5846_v18 = vld [vmem:[#allocation2 + $0x1c4] sm:$0xf] }
  0xf7   :  { %v4956_v33 = vor.u32 %v5967_v24, %v4953_v25  ;;  %v4473_v24 = vld [vmem:[#allocation2 + $0x228] sm:$0xf0]  ;;  %v4464_v25 = vor.u32 %v5858_v15, %v4463_v14  ;;  %v5920_v15 = vld [vmem:[#allocation2 + $0x414] sm:$0xf] }
  0xf9   :  { %1901 = vmatpush.bf16.msra.mxu2 %v4640_v31  ;;  %1914 = vmatpush.bf16.msra.mxu3 %v4644_v32  ;;  %v5954_v31 = vld [vmem:[#allocation2 + $0x51c] sm:$0xf0]  ;;  %v4952_v32 = vor.u32 %v5979_v23, %v4951_v19  ;;  %v4465_v19 = vld [vmem:[#allocation2 + $0x220] sm:$0xf0]  ;;  %v5847_v23 = vld [vmem:[#allocation2 + $0x1cc] sm:$0xf] }
  0xfa   :  { %1927 = vmatpush.bf16.msrb.mxu0 %v4648_v35  ;;  %1940 = vmatpush.bf16.msrb.mxu1 %v4652_v36  ;;  %v4849_v35 = vld [vmem:[#allocation2 + $0x520] sm:$0xf0]  ;;  %v4855_v36 = vld [vmem:[#allocation2 + $0x4c8] sm:$0xf]  ;;  %v4848_v40 = vor.u32 %v5954_v31, %v4847_v30  ;;  %v4476_v30 = vor.u32 %v5847_v23, %v4473_v24  ;;  %v4671_v24 = vld [vmem:[#allocation2 + $0x350] sm:$0xf] }
  0xfb   :  { %v4852_v41 = vor.u32 %v5942_v34, %v4849_v35  ;;  %v5822_v31 = vld [vmem:[#allocation2 + $0x104] sm:$0xf]  ;;  %v5835_v34 = vld [vmem:[#allocation2 + $0x164] sm:$0xf0]  ;;  %v5823_v35 = vld [vmem:[#allocation2 + $0x10c] sm:$0xf] }
  0xfd   :  { %1902 = vmatpush.bf16.msra.mxu2 %v4544_v43  ;;  %1915 = vmatpush.bf16.msra.mxu3 %v4548_v44  ;;  %v5930_v43 = vld [vmem:[#allocation2 + $0x45c] sm:$0xf0]  ;;  %v4856_v44 = vor.u32 %v5955_v37, %v4855_v36  ;;  %v4377_v36 = vld [vmem:[#allocation2 + $0x168] sm:$0xf0] }
  0xfe   :  { %1928 = vmatpush.bf16.msrb.mxu0 %v4552_v47  ;;  %1941 = vmatpush.bf16.msrb.mxu1 %v4556_v48  ;;  %v4753_v47 = vld [vmem:[#allocation2 + $0x460] sm:$0xf0]  ;;  %v4759_v48 = vld [vmem:[#allocation2 + $0x408] sm:$0xf]  ;;  %v4752_v52 = vor.u32 %v5930_v43, %v4751_v42  ;;  %v4271_v37 = vld [vmem:[#allocation2 + $0x40] sm:$0xf] }
  0xff   :  { %v4756_v53 = vor.u32 %v5918_v46, %v4753_v47  ;;  %v4273_v42 = vld [vmem:[#allocation2 + $0xa0] sm:$0xf0]  ;;  %v5811_v46 = vld [vmem:[#allocation2 + $0xa4] sm:$0xf0]  ;;  %v5799_v47 = vld [vmem:[#allocation2 + $0x4c] sm:$0xf] }
 0x101   :  { %1903 = vmatpush.bf16.msra.mxu2 %v4448_v55  ;;  %1916 = vmatpush.bf16.msra.mxu3 %v4452_v56  ;;  %v5906_v55 = vld [vmem:[#allocation2 + $0x39c] sm:$0xf0]  ;;  %v4760_v56 = vor.u32 %v5931_v49, %v4759_v48  ;;  %v4281_v48 = vld [vmem:[#allocation2 + $0xa8] sm:$0xf0]  ;;  %v4959_v49 = vld [vmem:[#allocation2 + $0x590] sm:$0xf] }
 0x102   :  { %1929 = vmatpush.bf16.msrb.mxu0 %v4456_v59  ;;  %1942 = vmatpush.bf16.msrb.mxu1 %v4460_v60  ;;  %v4657_v59 = vld [vmem:[#allocation2 + $0x3a0] sm:$0xf0]  ;;  %v4663_v60 = vld [vmem:[#allocation2 + $0x348] sm:$0xf]  ;;  %v4656_v0 = vor.u32 %v5906_v55, %v4655_v54 }
 0x103   :  { %v4660_v1 = vor.u32 %v5894_v58, %v4657_v59  ;;  %v4969_v58 = vld [vmem:[#allocation2 + $0x5f8] sm:$0xf0] }
 0x105   :  { %1904 = vmatpush.bf16.msra.mxu2 %v4352_v4  ;;  %1917 = vmatpush.bf16.msra.mxu3 %v4356_v5  ;;  %v4664_v4 = vor.u32 %v5907_v61, %v4663_v60  ;;  %v4668_v5 = vor.u32 %v5895_v62, %v4665_v63  ;;  %v4284_v60 = vor.u32 %v5799_v47, %v4281_v48  ;;  %v4863_v63 = vld [vmem:[#allocation2 + $0x4d0] sm:$0xf] }
 0x106   :  { %1930 = vmatpush.bf16.msrb.mxu0 %v4360_v9  ;;  %1943 = vmatpush.bf16.msrb.mxu1 %v4364_v10  ;;  %v5883_v9 = vld [vmem:[#allocation2 + $0x2e4] sm:$0xf0]  ;;  %v5871_v10 = vld [vmem:[#allocation2 + $0x28c] sm:$0xf]  ;;  %v4960_v61 = vor.u32 %v5980_v50, %v4959_v49  ;;  %v4479_v48 = vld [vmem:[#allocation2 + $0x1d0] sm:$0xf] }
 0x107   :  { %v4568_v16 = vor.u32 %v5883_v9, %v4567_v8  ;;  %v4572_v17 = vor.u32 %v5871_v10, %v4569_v11  ;;  %v4873_v8 = vld [vmem:[#allocation2 + $0x538] sm:$0xf0]  ;;  %v4767_v11 = vld [vmem:[#allocation2 + $0x410] sm:$0xf] }
 0x108   :  { %v4876_v14 = vor.u32 %v5945_v7, %v4873_v8  ;;  %v5860_v49 = vld [vmem:[#allocation2 + $0x22c] sm:$0xf0] }
 0x109   :  { %1905 = vmatpush.bf16.msra.mxu2 %v4256_v20  ;;  %1918 = vmatpush.bf16.msra.mxu3 %v4260_v21  ;;  %v4471_v20 = vld [vmem:[#allocation2 + $0x1c8] sm:$0xf]  ;;  %v4287_v8 = vld [vmem:[#allocation2 + $0x50] sm:$0xf] }
 0x10a   :  { %1931 = vmatpush.bf16.msrb.mxu0 %v4264_v26  ;;  %1944 = vmatpush.bf16.msrb.mxu1 %v4268_v27  ;;  %v5859_v21 = vld [vmem:[#allocation2 + $0x224] sm:$0xf0]  ;;  %v4468_v26 = vor.u32 %v5846_v18, %v4465_v19  ;;  %v4367_v27 = vld [vmem:[#allocation2 + $0x100] sm:$0xf]  ;;  %v5933_v18 = vld [vmem:[#allocation2 + $0x474] sm:$0xf0] }
 0x10b   :  { %v5921_v19 = vld [vmem:[#allocation2 + $0x41c] sm:$0xf] }
 0x10c   :  { %1906 = vmatmul.bf16.vlgmr.msra.gmra.mxu2 %v6474_v22  ;;  %1919 = vmatmul.bf16.vlgmr.msra.gmra.mxu3 %v6474_v22 }
 0x10d   :  { %1950 = vmatpush.bf16.msrb.mxu2 %v4944_v28  ;;  %1963 = vmatpush.bf16.msrb.mxu3 %v4948_v29  ;;  %v5834_v28 = vld [vmem:[#allocation2 + $0x15c] sm:$0xf0]  ;;  %v4472_v29 = vor.u32 %v5859_v21, %v4471_v20  ;;  %v4777_v20 = vld [vmem:[#allocation2 + $0x478] sm:$0xf0] }
 0x10e   :  { %1976 = vmatpush.bf16.msra.mxu0 %v4952_v32  ;;  %1989 = vmatpush.bf16.msra.mxu1 %v4956_v33  ;;  %v4369_v32 = vld [vmem:[#allocation2 + $0x160] sm:$0xf0]  ;;  %v4375_v33 = vld [vmem:[#allocation2 + $0x108] sm:$0xf]  ;;  %v4368_v38 = vor.u32 %v5834_v28, %v4367_v27  ;;  %v4780_v27 = vor.u32 %v5921_v19, %v4777_v20  ;;  %v5896_v28 = vld [vmem:[#allocation2 + $0x354] sm:$0xf] }
 0x10f   :  { %1932 = vmatmul.bf16.vlgmr.msrb.gmra.mxu0 %v6474_v22  ;;  %1945 = vmatmul.bf16.vlgmr.msrb.gmra.mxu1 %v6474_v22  ;;  %v4372_v39 = vor.u32 %v5822_v31, %v4369_v32  ;;  %v4376_v43 = vor.u32 %v5835_v34, %v4375_v33  ;;  %v5909_v31 = vld [vmem:[#allocation2 + $0x3b4] sm:$0xf0]  ;;  %v5897_v32 = vld [vmem:[#allocation2 + $0x35c] sm:$0xf] }
 0x110   :  { %v4681_v33 = vld [vmem:[#allocation2 + $0x3b8] sm:$0xf0] }
 0x111   :  { %1951 = vmatpush.bf16.msrb.mxu2 %v4848_v40  ;;  %1964 = vmatpush.bf16.msrb.mxu3 %v4852_v41  ;;  %v5810_v40 = vld [vmem:[#allocation2 + $0x9c] sm:$0xf0]  ;;  %v5798_v41 = vld [vmem:[#allocation2 + $0x44] sm:$0xf] }
 0x112   :  { %1977 = vmatpush.bf16.msra.mxu0 %v4856_v44  ;;  %1990 = vmatpush.bf16.msra.mxu1 %v4860_v45  ;;  %v4380_v44 = vor.u32 %v5823_v35, %v4377_v36  ;;  %v4279_v45 = vld [vmem:[#allocation2 + $0x48] sm:$0xf]  ;;  %v4272_v54 = vor.u32 %v5810_v40, %v4271_v37  ;;  %v4276_v55 = vor.u32 %v5798_v41, %v4273_v42  ;;  %v4575_v36 = vld [vmem:[#allocation2 + $0x290] sm:$0xf]  ;;  %v5872_v40 = vld [vmem:[#allocation2 + $0x294] sm:$0xf] }
 0x113   :  { %v4280_v59 = vor.u32 %v5811_v46, %v4279_v45  ;;  %v5884_v37 = vld [vmem:[#allocation2 + $0x2ec] sm:$0xf0]  ;;  %v4577_v41 = vld [vmem:[#allocation2 + $0x2f0] sm:$0xf0]  ;;  %v4583_v42 = vld [vmem:[#allocation2 + $0x298] sm:$0xf] }
 0x114   :  { %v4585_v45 = vld [vmem:[#allocation2 + $0x2f8] sm:$0xf0]  ;;  %v4576_v46 = vor.u32 %v5884_v37, %v4575_v36  ;;  %v4580_v47 = vor.u32 %v5872_v40, %v4577_v41  ;;  %v5986_v36 = vld [vmem:[%s7191_s4 + $0x20] sm:$0xff] }
 0x115   :  { %1952 = vmatpush.bf16.msrb.mxu2 %v4752_v52  ;;  %1965 = vmatpush.bf16.msrb.mxu3 %v4756_v53  ;;  %v4961_v52 = vld [vmem:[#allocation2 + $0x5f0] sm:$0xf0]  ;;  %v4967_v53 = vld [vmem:[#allocation2 + $0x598] sm:$0xf]  ;;  %v5994_v37 = vld [vmem:[%s7191_s4 + $0x60] sm:$0xff] }
 0x116   :  { %1978 = vmatpush.bf16.msra.mxu0 %v4760_v56  ;;  %1991 = vmatpush.bf16.msra.mxu1 %v4764_v57  ;;  %v5981_v56 = vld [vmem:[#allocation2 + $0x5f4] sm:$0xf0]  ;;  %v5969_v57 = vld [vmem:[#allocation2 + $0x59c] sm:$0xf]  ;;  %v4964_v62 = vor.u32 %v5968_v51, %v4961_v52  ;;  %v5848_v52 = vld [vmem:[#allocation2 + $0x1d4] sm:$0xf] }
 0x117   :  { %v4972_v2 = vor.u32 %v5969_v57, %v4969_v58  ;;  %v4489_v57 = vld [vmem:[#allocation2 + $0x238] sm:$0xf0]  ;;  %v4480_v58 = vor.u32 %v5860_v49, %v4479_v48  ;;  %v6563_v48 = vld [vmem:[%s7190_s3] sm:$0xff]  ;;  %v5984_v49 = vld [vmem:[%s7191_s4 + $0x10] sm:$0xff] }
 0x119   :  { %1953 = vmatpush.bf16.msrb.mxu2 %v4656_v0  ;;  %1966 = vmatpush.bf16.msrb.mxu3 %v4660_v1  ;;  %v5956_v0 = vld [vmem:[#allocation2 + $0x52c] sm:$0xf0]  ;;  %v4968_v1 = vor.u32 %v5981_v56, %v4967_v53  ;;  %v4481_v53 = vld [vmem:[#allocation2 + $0x230] sm:$0xf0]  ;;  %v5849_v56 = vld [vmem:[#allocation2 + $0x1dc] sm:$0xf] }
 0x11a   :  { %1979 = vmatpush.bf16.msra.mxu0 %v4664_v4  ;;  %1992 = vmatpush.bf16.msra.mxu1 %v4668_v5  ;;  %v4865_v4 = vld [vmem:[#allocation2 + $0x530] sm:$0xf0]  ;;  %v4871_v5 = vld [vmem:[#allocation2 + $0x4d8] sm:$0xf]  ;;  %v4864_v9 = vor.u32 %v5956_v0, %v4863_v63  ;;  %v4492_v63 = vor.u32 %v5849_v56, %v4489_v57  ;;  %v735_v56 = vperm.slane %v6563_v48, 1  ;;  %v736_v57 = vperm.slane %v6563_v48, 2 }
 0x11b   :  { %v4868_v10 = vor.u32 %v5944_v3, %v4865_v4  ;;  %v5824_v0 = vld [vmem:[#allocation2 + $0x114] sm:$0xf]  ;;  %v5837_v3 = vld [vmem:[#allocation2 + $0x174] sm:$0xf0]  ;;  %v5825_v4 = vld [vmem:[#allocation2 + $0x11c] sm:$0xf] }
 0x11d   :  { %1954 = vmatpush.bf16.msrb.mxu2 %v4560_v12  ;;  %1967 = vmatpush.bf16.msrb.mxu3 %v4564_v13  ;;  %v5932_v12 = vld [vmem:[#allocation2 + $0x46c] sm:$0xf0]  ;;  %v4872_v13 = vor.u32 %v5957_v6, %v4871_v5  ;;  %v4393_v5 = vld [vmem:[#allocation2 + $0x178] sm:$0xf0] }
 0x11e   :  { %1980 = vmatpush.bf16.msra.mxu0 %v4568_v16  ;;  %1993 = vmatpush.bf16.msra.mxu1 %v4572_v17  ;;  %v4769_v16 = vld [vmem:[#allocation2 + $0x470] sm:$0xf0]  ;;  %v4775_v17 = vld [vmem:[#allocation2 + $0x418] sm:$0xf]  ;;  %v4768_v21 = vor.u32 %v5932_v12, %v4767_v11  ;;  %v4396_v11 = vor.u32 %v5825_v4, %v4393_v5  ;;  %v5982_v5 = vld [vmem:[%s7191_s4] sm:$0xff] }
 0x11f   :  { %v4772_v23 = vor.u32 %v5920_v15, %v4769_v16  ;;  %v5800_v12 = vld [vmem:[#allocation2 + $0x54] sm:$0xf]  ;;  %v5813_v15 = vld [vmem:[#allocation2 + $0xb4] sm:$0xf0]  ;;  %v5801_v16 = vld [vmem:[#allocation2 + $0x5c] sm:$0xf] }
 0x121   :  { %1955 = vmatpush.bf16.msrb.mxu2 %v4464_v25  ;;  %1968 = vmatpush.bf16.msrb.mxu3 %v4468_v26  ;;  %v5908_v25 = vld [vmem:[#allocation2 + $0x3ac] sm:$0xf0]  ;;  %v4776_v26 = vor.u32 %v5933_v18, %v4775_v17  ;;  %v4297_v17 = vld [vmem:[#allocation2 + $0xb8] sm:$0xf0] }
 0x122   :  { %1981 = vmatpush.bf16.msra.mxu0 %v4472_v29  ;;  %1994 = vmatpush.bf16.msra.mxu1 %v4476_v30  ;;  %v4673_v29 = vld [vmem:[#allocation2 + $0x3b0] sm:$0xf0]  ;;  %v4679_v30 = vld [vmem:[#allocation2 + $0x358] sm:$0xf]  ;;  %v4672_v34 = vor.u32 %v5908_v25, %v4671_v24 }
 0x123   :  { %v4676_v35 = vor.u32 %v5896_v28, %v4673_v29  ;;  %v5997_v24 = vld [vmem:[%s7191_s4 + $0x78] sm:$0xff]  ;;  %v5996_v28 = vld [vmem:[%s7191_s4 + $0x70] sm:$0xff] }
 0x124   :  { %v6005_v25 = vld [vmem:[%s7191_s4 + $0xb8] sm:$0xff]  ;;  %v6004_v29 = vld [vmem:[%s7191_s4 + $0xb0] sm:$0xff] }
 0x125   :  { %1956 = vmatpush.bf16.msrb.mxu2 %v4368_v38  ;;  %1969 = vmatpush.bf16.msrb.mxu3 %v4372_v39  ;;  %v4680_v38 = vor.u32 %v5909_v31, %v4679_v30  ;;  %v4684_v39 = vor.u32 %v5897_v32, %v4681_v33  ;;  %v6012_v30 = vld [vmem:[%s7191_s4 + $0xf0] sm:$0xff]  ;;  %v5987_v31 = vld [vmem:[%s7191_s4 + $0x28] sm:$0xff] }
 0x126   :  { %1982 = vmatpush.bf16.msra.mxu0 %v4376_v43  ;;  %1995 = vmatpush.bf16.msra.mxu1 %v4380_v44  ;;  %v5885_v43 = vld [vmem:[#allocation2 + $0x2f4] sm:$0xf0]  ;;  %v5873_v44 = vld [vmem:[#allocation2 + $0x29c] sm:$0xf]  ;;  %v5995_v32 = vld [vmem:[%s7191_s4 + $0x68] sm:$0xff] }
 0x127   :  { %v4584_v50 = vor.u32 %v5885_v43, %v4583_v42  ;;  %v4588_v51 = vor.u32 %v5873_v44, %v4585_v45  ;;  %v5985_v42 = vld [vmem:[%s7191_s4 + $0x18] sm:$0xff] }
 0x128   :  { %v5993_v43 = vld [vmem:[%s7191_s4 + $0x58] sm:$0xff] }
 0x129   :  { %1957 = vmatpush.bf16.msrb.mxu2 %v4272_v54  ;;  %1970 = vmatpush.bf16.msrb.mxu3 %v4276_v55  ;;  %v4487_v54 = vld [vmem:[#allocation2 + $0x1d8] sm:$0xf] }
 0x12a   :  { %1983 = vmatpush.bf16.msra.mxu0 %v4280_v59  ;;  %1996 = vmatpush.bf16.msra.mxu1 %v4284_v60  ;;  %v5861_v55 = vld [vmem:[#allocation2 + $0x234] sm:$0xf0]  ;;  %v4484_v59 = vor.u32 %v5848_v52, %v4481_v53  ;;  %v4383_v60 = vld [vmem:[#allocation2 + $0x110] sm:$0xf] }
 0x12b   :  { %v6008_v52 = vld [vmem:[%s7191_s4 + $0xd0] sm:$0xff] }
 0x12c   :  { %1958 = vmatmul.bf16.vlgmr.msrb.gmra.mxu2 %v6474_v22  ;;  %1971 = vmatmul.bf16.vlgmr.msrb.gmra.mxu3 %v6474_v22 }
 0x12d   :  { %2002 = vmatpush.bf16.msra.mxu2 %v4960_v61  ;;  %2015 = vmatpush.bf16.msra.mxu3 %v4964_v62  ;;  %v5836_v61 = vld [vmem:[#allocation2 + $0x16c] sm:$0xf0]  ;;  %v4488_v62 = vor.u32 %v5861_v55, %v4487_v54  ;;  %v734_v55 = vperm.slane %v6563_v48, 0 }
 0x12e   :  { %2028 = vmatpush.bf16.msrb.mxu0 %v4968_v1  ;;  %2041 = vmatpush.bf16.msrb.mxu1 %v4972_v2  ;;  %v4385_v1 = vld [vmem:[#allocation2 + $0x170] sm:$0xf0]  ;;  %v4391_v2 = vld [vmem:[#allocation2 + $0x118] sm:$0xf]  ;;  %v4384_v6 = vor.u32 %v5836_v61, %v4383_v60  ;;  %v5991_v60 = vld [vmem:[%s7191_s4 + $0x48] sm:$0xff] }
 0x12f   :  { %1984 = vmatmul.bf16.vlgmr.msra.gmra.mxu0 %v6474_v22  ;;  %1997 = vmatmul.bf16.vlgmr.msra.gmra.mxu1 %v6474_v22  ;;  %v4388_v7 = vor.u32 %v5824_v0, %v4385_v1  ;;  %v6007_v0 = vld [vmem:[%s7191_s4 + $0xc8] sm:$0xff] }
 0x131   :  { %2003 = vmatpush.bf16.msra.mxu2 %v4864_v9  ;;  %2016 = vmatpush.bf16.msra.mxu3 %v4868_v10  ;;  %v5812_v9 = vld [vmem:[#allocation2 + $0xac] sm:$0xf0]  ;;  %v4392_v10 = vor.u32 %v5837_v3, %v4391_v2 }
 0x132   :  { %2029 = vmatpush.bf16.msrb.mxu0 %v4872_v13  ;;  %2042 = vmatpush.bf16.msrb.mxu1 %v4876_v14  ;;  %v4289_v13 = vld [vmem:[#allocation2 + $0xb0] sm:$0xf0]  ;;  %v4295_v14 = vld [vmem:[#allocation2 + $0x58] sm:$0xf]  ;;  %v4288_v18 = vor.u32 %v5812_v9, %v4287_v8  ;;  %v6006_v8 = vld [vmem:[%s7191_s4 + $0xc0] sm:$0xff] }
 0x133   :  { %v4292_v19 = vor.u32 %v5800_v12, %v4289_v13  ;;  %v4296_v20 = vor.u32 %v5813_v15, %v4295_v14  ;;  %v6021_v13 = vld [vmem:[%s7191_s4 + $0x138] sm:$0xff] }
 0x134   :  { %v6029_v14 = vld [vmem:[%s7191_s4 + $0x178] sm:$0xff] }
 0x135   :  { %2004 = vmatpush.bf16.msra.mxu2 %v4768_v21  ;;  %2017 = vmatpush.bf16.msra.mxu3 %v4772_v23  ;;  %v4300_v21 = vor.u32 %v5801_v16, %v4297_v17  ;;  %v5989_v23 = vld [vmem:[%s7191_s4 + $0x38] sm:$0xff] }
 0x136   :  { %2030 = vmatpush.bf16.msrb.mxu0 %v4776_v26  ;;  %2043 = vmatpush.bf16.msrb.mxu1 %v4780_v27  ;;  %v6013_v26 = vld [vmem:[%s7191_s4 + $0xf8] sm:$0xff]  ;;  %v5988_v27 = vld [vmem:[%s7191_s4 + $0x30] sm:$0xff] }
 0x137   :  { %v6037_v17 = vld [vmem:[%s7191_s4 + $0x1b8] sm:$0xff] }
 0x139   :  { %2005 = vmatpush.bf16.msra.mxu2 %v4672_v34  ;;  %2018 = vmatpush.bf16.msra.mxu3 %v4676_v35  ;;  %v6003_v35 = vld [vmem:[%s7191_s4 + $0xa8] sm:$0xff] }
 0x13a   :  { %2031 = vmatpush.bf16.msrb.mxu0 %v4680_v38  ;;  %2044 = vmatpush.bf16.msrb.mxu1 %v4684_v39  ;;  %v6002_v38 = vld [vmem:[%s7191_s4 + $0xa0] sm:$0xff] }
 0x13b   :  { %v6010_v39 = vld [vmem:[%s7191_s4 + $0xe0] sm:$0xff] }
 0x13d   :  { %2006 = vmatpush.bf16.msra.mxu2 %v4576_v46  ;;  %2019 = vmatpush.bf16.msra.mxu3 %v4580_v47  ;;  %v6001_v46 = vld [vmem:[%s7191_s4 + $0x98] sm:$0xff] }
 0x13e   :  { %2032 = vmatpush.bf16.msrb.mxu0 %v4584_v50  ;;  %2045 = vmatpush.bf16.msrb.mxu1 %v4588_v51  ;;  %v6009_v47 = vld [vmem:[%s7191_s4 + $0xd8] sm:$0xff]  ;;  %v5992_v50 = vld [vmem:[%s7191_s4 + $0x50] sm:$0xff] }
 0x13f   :  { %v6000_v51 = vld [vmem:[%s7191_s4 + $0x90] sm:$0xff] }
 0x141   :  { %2007 = vmatpush.bf16.msra.mxu2 %v4480_v58  ;;  %2020 = vmatpush.bf16.msra.mxu3 %v4484_v59  ;;  %v737_v58 = vperm.slane %v6563_v48, 3  ;;  %v5983_v59 = vld [vmem:[%s7191_s4 + $0x8] sm:$0xff] }
 0x142   :  { %2033 = vmatpush.bf16.msrb.mxu0 %v4488_v62  ;;  %2046 = vmatpush.bf16.msrb.mxu1 %v4492_v63  ;;  %v5999_v63 = vld [vmem:[%s7191_s4 + $0x88] sm:$0xff] }
 0x145   :  { %2008 = vmatpush.bf16.msra.mxu2 %v4384_v6  ;;  %2021 = vmatpush.bf16.msra.mxu3 %v4388_v7  ;;  %v5990_v6 = vld [vmem:[%s7191_s4 + $0x40] sm:$0xff] }
 0x146   :  { %2034 = vmatpush.bf16.msrb.mxu0 %v4392_v10  ;;  %2047 = vmatpush.bf16.msrb.mxu1 %v4396_v11  ;;  %v5998_v7 = vld [vmem:[%s7191_s4 + $0x80] sm:$0xff] }
 0x149   :  { %2009 = vmatpush.bf16.msra.mxu2 %v4288_v18  ;;  %2022 = vmatpush.bf16.msra.mxu3 %v4292_v19  ;;  %v1777_v33 = vpop.f32.mrf.mxu0  ;;  %v1790_v34 = vpop.f32.mrf.mxu1  ;;  %v6045_v18 = vld [vmem:[%s7191_s4 + $0x1f8] sm:$0xff] }
 0x14a   :  { %2035 = vmatpush.bf16.msrb.mxu0 %v4296_v20  ;;  %2048 = vmatpush.bf16.msrb.mxu1 %v4300_v21  ;;  %v1778_v3 = vadd.f32 %v1777_v33, %v736_v57  ;;  %v1791_v4 = vadd.f32 %v1790_v34, %v737_v58  ;;  %v6027_v33 = vld [vmem:[%s7191_s4 + $0x168] sm:$0xff]  ;;  %v741_v57 = vperm.slane %v6563_v48, 7 }
 0x14b   :  { %v6035_v34 = vld [vmem:[%s7191_s4 + $0x1a8] sm:$0xff] }
 0x14c   :  { %2010 = vmatmul.bf16.vlgmr.msra.gmra.mxu2 %v6474_v22  ;;  %2023 = vmatmul.bf16.vlgmr.msra.gmra.mxu3 %v6474_v22  ;;  %v2056_v15 = vmax.f32 %v1778_v3, 0.0  ;;  %v2057_v16 = vmax.f32 %v1791_v4, 0.0  ;;  %v6015_v58 = vld [vmem:[%s7191_s4 + $0x108] sm:$0xff] }
 0x14d   :  { %3130 = vmatpush.bf16.msrb.mxu2 %v5989_v23  ;;  %3143 = vmatpush.bf16.msrb.mxu3 %v5997_v24  ;;  %v6020_v24 = vld [vmem:[%s7191_s4 + $0x130] sm:$0xff] }
 0x14e   :  { %3156 = vmatpush.bf16.msra.mxu0 %v6005_v25  ;;  %3169 = vmatpush.bf16.msra.mxu1 %v6013_v26  ;;  %v1751_v40 = vpop.f32.mrf.mxu2  ;;  %v1764_v41 = vpop.f32.mrf.mxu3  ;;  %v6028_v25 = vld [vmem:[%s7191_s4 + $0x170] sm:$0xff]  ;;  %v2080_v26 = vpack.c.bf16 %v2056_v15, %v2056_v15 }
 0x14f   :  { %2036 = vmatmul.bf16.vlgmr.msrb.gmra.mxu0 %v6474_v22  ;;  %2049 = vmatmul.bf16.vlgmr.msrb.gmra.mxu1 %v6474_v22  ;;  %v6011_v22 = vld [vmem:[%s7191_s4 + $0xe8] sm:$0xff]  ;;  %v1752_v1 = vadd.f32 %v1751_v40, %v734_v55  ;;  %v1765_v2 = vadd.f32 %v1764_v41, %v735_v56  ;;  %v6042_v40 = vld [vmem:[%s7191_s4 + $0x1e0] sm:$0xff]  ;;  %v6017_v41 = vld [vmem:[%s7191_s4 + $0x118] sm:$0xff]  ;;  %v739_v55 = vperm.slane %v6563_v48, 5  ;;  %v740_v56 = vperm.slane %v6563_v48, 6 }
 0x151   :  { %3131 = vmatpush.bf16.msrb.mxu2 %v5988_v27  ;;  %3144 = vmatpush.bf16.msrb.mxu3 %v5996_v28  ;;  %v1779_v44 = vpop.f32.mrf.mxu0  ;;  %v1792_v45 = vpop.f32.mrf.mxu1  ;;  %v2054_v11 = vmax.f32 %v1752_v1, 0.0  ;;  %v2055_v12 = vmax.f32 %v1765_v2, 0.0  ;;  %v2081_v27 = vpack.c.bf16 %v2057_v16, %v2057_v16  ;;  %v6036_v28 = vld [vmem:[%s7191_s4 + $0x1b0] sm:$0xff] }
 0x152   :  { %3157 = vmatpush.bf16.msra.mxu0 %v6004_v29  ;;  %3170 = vmatpush.bf16.msra.mxu1 %v6012_v30  ;;  %v6044_v29 = vld [vmem:[%s7191_s4 + $0x1f0] sm:$0xff]  ;;  %v6041_v44 = vld [vmem:[%s7191_s4 + $0x1d8] sm:$0xff] }
 0x153   :  { %v2078_v21 = vpack.c.bf16 %v2054_v11, %v2054_v11  ;;  %v2079_v23 = vpack.c.bf16 %v2055_v12, %v2055_v12 }
 0x155   :  { %3132 = vmatpush.bf16.msrb.mxu2 %v5987_v31  ;;  %3145 = vmatpush.bf16.msrb.mxu3 %v5995_v32  ;;  %v6019_v32 = vld [vmem:[%s7191_s4 + $0x128] sm:$0xff] }
 0x156   :  { %3158 = vmatpush.bf16.msra.mxu0 %v6003_v35  ;;  %3171 = vmatpush.bf16.msra.mxu1 %v6011_v22  ;;  %v1753_v53 = vpop.f32.mrf.mxu2  ;;  %v1766_v54 = vpop.f32.mrf.mxu3  ;;  %v6043_v35 = vld [vmem:[%s7191_s4 + $0x1e8] sm:$0xff] }
 0x157   :  { %v6040_v53 = vld [vmem:[%s7191_s4 + $0x1d0] sm:$0xff]  ;;  %v738_v54 = vperm.slane %v6563_v48, 4  ;;  %v6039_v48 = vld [vmem:[%s7191_s4 + $0x1c8] sm:$0xff] }
 0x159   :  { %3133 = vmatpush.bf16.msrb.mxu2 %v5986_v36  ;;  %3146 = vmatpush.bf16.msrb.mxu3 %v5994_v37  ;;  %v6587_v61 = vpop.f32.mrf.mxu0  ;;  %v6589_v62 = vpop.f32.mrf.mxu1  ;;  %v6018_v37 = vld [vmem:[%s7191_s4 + $0x120] sm:$0xff] }
 0x15a   :  { %3159 = vmatpush.bf16.msra.mxu0 %v6002_v38  ;;  %3172 = vmatpush.bf16.msra.mxu1 %v6010_v39  ;;  %v6026_v38 = vld [vmem:[%s7191_s4 + $0x160] sm:$0xff]  ;;  %v1830_v3 = vadd.f32 %v6587_v61, %v740_v56  ;;  %v1843_v4 = vadd.f32 %v6589_v62, %v741_v57  ;;  %v6055_v56 = vld [vmem:[%s7191_s4 + $0x248] sm:$0xff] }
 0x15b   :  { %v6034_v39 = vld [vmem:[%s7191_s4 + $0x1a0] sm:$0xff]  ;;  %v6063_v57 = vld [vmem:[%s7191_s4 + $0x288] sm:$0xff] }
 0x15c   :  { %v6038_v61 = vld [vmem:[%s7191_s4 + $0x1c0] sm:$0xff]  ;;  %v2060_v11 = vmax.f32 %v1830_v3, 0.0  ;;  %v2061_v12 = vmax.f32 %v1843_v4, 0.0  ;;  %v6085_v4 = vld [vmem:[%s7191_s4 + $0x338] sm:$0xff] }
 0x15d   :  { %3134 = vmatpush.bf16.msrb.mxu2 %v5985_v42  ;;  %3147 = vmatpush.bf16.msrb.mxu3 %v5993_v43  ;;  %v6025_v42 = vld [vmem:[%s7191_s4 + $0x158] sm:$0xff]  ;;  %v6054_v3 = vld [vmem:[%s7191_s4 + $0x240] sm:$0xff] }
 0x15e   :  { %3160 = vmatpush.bf16.msra.mxu0 %v6001_v46  ;;  %3173 = vmatpush.bf16.msra.mxu1 %v6009_v47  ;;  %v6609_v9 = vpop.f32.mrf.mxu2  ;;  %v6611_v10 = vpop.f32.mrf.mxu3  ;;  %v6033_v43 = vld [vmem:[%s7191_s4 + $0x198] sm:$0xff] }
 0x15f   :  { %v1804_v1 = vadd.f32 %v6609_v9, %v738_v54  ;;  %v1817_v2 = vadd.f32 %v6611_v10, %v739_v55  ;;  %v6053_v9 = vld [vmem:[%s7191_s4 + $0x238] sm:$0xff]  ;;  %v6047_v55 = vld [vmem:[%s7191_s4 + $0x208] sm:$0xff] }
 0x160   :  { %v6061_v10 = vld [vmem:[%s7191_s4 + $0x278] sm:$0xff] }
 0x161   :  { %3135 = vmatpush.bf16.msrb.mxu2 %v5984_v49  ;;  %3148 = vmatpush.bf16.msrb.mxu3 %v5992_v50  ;;  %v1831_v19 = vpop.f32.mrf.mxu0  ;;  %v1844_v20 = vpop.f32.mrf.mxu1  ;;  %v6016_v50 = vld [vmem:[%s7191_s4 + $0x110] sm:$0xff]  ;;  %v2058_v62 = vmax.f32 %v1804_v1, 0.0 }
 0x162   :  { %3161 = vmatpush.bf16.msra.mxu0 %v6000_v51  ;;  %3174 = vmatpush.bf16.msra.mxu1 %v6008_v52  ;;  %v6024_v51 = vld [vmem:[%s7191_s4 + $0x150] sm:$0xff]  ;;  %v2084_v19 = vpack.c.bf16 %v2060_v11, %v2060_v11  ;;  %v2085_v20 = vpack.c.bf16 %v2061_v12, %v2061_v12 }
 0x163   :  { %v6032_v52 = vld [vmem:[%s7191_s4 + $0x190] sm:$0xff]  ;;  %v2082_v15 = vpack.c.bf16 %v2058_v62, %v2058_v62  ;;  %v6109_v62 = vld [vmem:[%s7191_s4 + $0x3f8] sm:$0xff] }
 0x164   :  { %v6092_v11 = vld [vmem:[%s7191_s4 + $0x370] sm:$0xff] }
 0x165   :  { %3136 = vmatpush.bf16.msrb.mxu2 %v5983_v59  ;;  %3149 = vmatpush.bf16.msrb.mxu3 %v5991_v60  ;;  %v6023_v59 = vld [vmem:[%s7191_s4 + $0x148] sm:$0xff] }
 0x166   :  { %3162 = vmatpush.bf16.msra.mxu0 %v5999_v63  ;;  %3175 = vmatpush.bf16.msra.mxu1 %v6007_v0  ;;  %v1805_v30 = vpop.f32.mrf.mxu2  ;;  %v1818_v31 = vpop.f32.mrf.mxu3  ;;  %v6031_v60 = vld [vmem:[%s7191_s4 + $0x188] sm:$0xff] }
 0x167   :  { %v6050_v30 = vld [vmem:[%s7191_s4 + $0x220] sm:$0xff] }
 0x168   :  { %v6058_v31 = vld [vmem:[%s7191_s4 + $0x260] sm:$0xff] }
 0x169   :  { %3137 = vmatpush.bf16.msrb.mxu2 %v5982_v5  ;;  %3150 = vmatpush.bf16.msrb.mxu3 %v5990_v6  ;;  %v6014_v5 = vld [vmem:[%s7191_s4 + $0x100] sm:$0xff] }
 0x16a   :  { %3163 = vmatpush.bf16.msra.mxu0 %v5998_v7  ;;  %3176 = vmatpush.bf16.msra.mxu1 %v6006_v8  ;;  %v6022_v6 = vld [vmem:[%s7191_s4 + $0x140] sm:$0xff]  ;;  %v2059_v8 = vmax.f32 %v1817_v2, 0.0 }
 0x16b   :  { %v6030_v7 = vld [vmem:[%s7191_s4 + $0x180] sm:$0xff] }
 0x16c   :  { %3138 = vmatmul.bf16.vlgmr.msrb.gmra.mxu2 %v2078_v21  ;;  %3151 = vmatmul.bf16.vlgmr.msrb.gmra.mxu3 %v2079_v23  ;;  %v6649_v22 = vpop.f32.mrf.mxu0  ;;  %v6651_v36 = vpop.f32.mrf.mxu1  ;;  %v2083_v16 = vpack.c.bf16 %v2059_v8, %v2059_v8  ;;  %v6068_v21 = vld [vmem:[%s7191_s4 + $0x2b0] sm:$0xff]  ;;  %v6046_v2 = vld [vmem:[%s7191_s4 + $0x200] sm:$0xff] }
 0x16d   :  { %3182 = vmatpush.bf16.msra.mxu2 %v6021_v13  ;;  %3195 = vmatpush.bf16.msra.mxu3 %v6029_v14  ;;  %v6069_v13 = vld [vmem:[%s7191_s4 + $0x2b8] sm:$0xff]  ;;  %v6076_v23 = vld [vmem:[%s7191_s4 + $0x2f0] sm:$0xff] }
 0x16e   :  { %3208 = vmatpush.bf16.msrb.mxu0 %v6037_v17  ;;  %3221 = vmatpush.bf16.msrb.mxu1 %v6045_v18  ;;  %v6077_v14 = vld [vmem:[%s7191_s4 + $0x2f8] sm:$0xff]  ;;  %v6052_v17 = vld [vmem:[%s7191_s4 + $0x230] sm:$0xff] }
 0x16f   :  { %3164 = vmatmul.bf16.vlgmr.msra.gmra.mxu0 %v2080_v26  ;;  %3177 = vmatmul.bf16.vlgmr.msra.gmra.mxu1 %v2081_v27  ;;  %v6677_v45 = vpop.f32.mrf.mxu2  ;;  %v6679_v46 = vpop.f32.mrf.mxu3  ;;  %v6060_v18 = vld [vmem:[%s7191_s4 + $0x270] sm:$0xff]  ;;  %v6067_v26 = vld [vmem:[%s7191_s4 + $0x2a8] sm:$0xff] }
 0x170   :  { %v6075_v27 = vld [vmem:[%s7191_s4 + $0x2e8] sm:$0xff] }
 0x171   :  { %3183 = vmatpush.bf16.msra.mxu2 %v6020_v24  ;;  %3196 = vmatpush.bf16.msra.mxu3 %v6028_v25  ;;  %v6051_v24 = vld [vmem:[%s7191_s4 + $0x228] sm:$0xff] }
 0x172   :  { %3209 = vmatpush.bf16.msrb.mxu0 %v6036_v28  ;;  %3222 = vmatpush.bf16.msrb.mxu1 %v6044_v29  ;;  %v6059_v25 = vld [vmem:[%s7191_s4 + $0x268] sm:$0xff] }
 0x174   :  { %v1883_v47 = vpop.f32.mrf.mxu0  ;;  %v1896_v49 = vpop.f32.mrf.mxu1 }
 0x175   :  { %3184 = vmatpush.bf16.msra.mxu2 %v6019_v32  ;;  %3197 = vmatpush.bf16.msra.mxu3 %v6027_v33  ;;  %v6066_v32 = vld [vmem:[%s7191_s4 + $0x2a0] sm:$0xff]  ;;  %v6056_v47 = vld [vmem:[%s7191_s4 + $0x250] sm:$0xff] }
 0x176   :  { %3210 = vmatpush.bf16.msrb.mxu0 %v6035_v34  ;;  %3223 = vmatpush.bf16.msrb.mxu1 %v6043_v35  ;;  %v6074_v33 = vld [vmem:[%s7191_s4 + $0x2e0] sm:$0xff]  ;;  %v6049_v34 = vld [vmem:[%s7191_s4 + $0x218] sm:$0xff]  ;;  %v6064_v49 = vld [vmem:[%s7191_s4 + $0x290] sm:$0xff] }
 0x177   :  { %v1857_v63 = vpop.f32.mrf.mxu2  ;;  %v1870_v0 = vpop.f32.mrf.mxu3  ;;  %v6057_v35 = vld [vmem:[%s7191_s4 + $0x258] sm:$0xff] }
 0x179   :  { %3185 = vmatpush.bf16.msra.mxu2 %v6018_v37  ;;  %3198 = vmatpush.bf16.msra.mxu3 %v6026_v38  ;;  %v6065_v37 = vld [vmem:[%s7191_s4 + $0x298] sm:$0xff] }
 0x17a   :  { %3211 = vmatpush.bf16.msrb.mxu0 %v6034_v39  ;;  %3224 = vmatpush.bf16.msrb.mxu1 %v6042_v40  ;;  %v6073_v38 = vld [vmem:[%s7191_s4 + $0x2d8] sm:$0xff] }
 0x17d   :  { %3186 = vmatpush.bf16.msra.mxu2 %v6017_v41  ;;  %3199 = vmatpush.bf16.msra.mxu3 %v6025_v42  ;;  %v6796_v41 = vld [vmem:[%s7190_s3 + $0x8] sm:$0xff] }
 0x17e   :  { %3212 = vmatpush.bf16.msrb.mxu0 %v6033_v43  ;;  %3225 = vmatpush.bf16.msrb.mxu1 %v6041_v44  ;;  %v6048_v44 = vld [vmem:[%s7191_s4 + $0x210] sm:$0xff]  ;;  %v745_v54 = vperm.slane %v6796_v41, 3 }
 0x180   :  { %v1895_v1 = vadd.f32 %v6651_v36, %v745_v54  ;;  %v6095_v54 = vld [vmem:[%s7191_s4 + $0x388] sm:$0xff] }
 0x181   :  { %3187 = vmatpush.bf16.msra.mxu2 %v6016_v50  ;;  %3200 = vmatpush.bf16.msra.mxu3 %v6024_v51  ;;  %v6072_v50 = vld [vmem:[%s7191_s4 + $0x2d0] sm:$0xff]  ;;  %v742_v51 = vperm.slane %v6796_v41, 0 }
 0x182   :  { %3213 = vmatpush.bf16.msrb.mxu0 %v6032_v52  ;;  %3226 = vmatpush.bf16.msrb.mxu1 %v6040_v53  ;;  %v743_v52 = vperm.slane %v6796_v41, 1  ;;  %v744_v53 = vperm.slane %v6796_v41, 2 }
 0x184   :  { %v1869_v63 = vadd.f32 %v6679_v46, %v743_v52  ;;  %v1882_v0 = vadd.f32 %v6649_v22, %v744_v53  ;;  %v6070_v22 = vld [vmem:[%s7191_s4 + $0x2c0] sm:$0xff]  ;;  %v6079_v52 = vld [vmem:[%s7191_s4 + $0x308] sm:$0xff] }
 0x185   :  { %3188 = vmatpush.bf16.msra.mxu2 %v6015_v58  ;;  %3201 = vmatpush.bf16.msra.mxu3 %v6023_v59  ;;  %v6071_v58 = vld [vmem:[%s7191_s4 + $0x2c8] sm:$0xff] }
 0x186   :  { %3214 = vmatpush.bf16.msrb.mxu0 %v6031_v60  ;;  %3227 = vmatpush.bf16.msrb.mxu1 %v6039_v48  ;;  %v1856_v48 = vadd.f32 %v6677_v45, %v742_v51  ;;  %v6062_v45 = vld [vmem:[%s7191_s4 + $0x280] sm:$0xff]  ;;  %v2063_v46 = vmax.f32 %v1869_v63, 0.0  ;;  %v749_v51 = vperm.slane %v6796_v41, 7  ;;  %v6087_v53 = vld [vmem:[%s7191_s4 + $0x348] sm:$0xff] }
 0x187   :  { %v6086_v63 = vld [vmem:[%s7191_s4 + $0x340] sm:$0xff] }
 0x188   :  { %v2062_v36 = vmax.f32 %v1856_v48, 0.0  ;;  %v6078_v48 = vld [vmem:[%s7191_s4 + $0x300] sm:$0xff] }
 0x189   :  { %3189 = vmatpush.bf16.msra.mxu2 %v6014_v5  ;;  %3202 = vmatpush.bf16.msra.mxu3 %v6022_v6  ;;  %v6093_v5 = vld [vmem:[%s7191_s4 + $0x378] sm:$0xff]  ;;  %v2064_v6 = vmax.f32 %v1882_v0, 0.0 }
 0x18a   :  { %3215 = vmatpush.bf16.msrb.mxu0 %v6030_v7  ;;  %3228 = vmatpush.bf16.msrb.mxu1 %v6038_v61  ;;  %v2065_v7 = vmax.f32 %v1895_v1, 0.0  ;;  %v6101_v61 = vld [vmem:[%s7191_s4 + $0x3b8] sm:$0xff]  ;;  %v2086_v8 = vpack.c.bf16 %v2062_v36, %v2062_v36 }
 0x18b   :  { %v2088_v12 = vpack.c.bf16 %v2064_v6, %v2064_v6  ;;  %v6117_v0 = vld [vmem:[%s7193_s6 + $0x38] sm:$0xff] }
 0x18c   :  { %3190 = vmatmul.bf16.vlgmr.msra.gmra.mxu2 %v2082_v15  ;;  %3203 = vmatmul.bf16.vlgmr.msra.gmra.mxu3 %v2083_v16  ;;  %v6761_v28 = vpop.f32.mrf.mxu0  ;;  %v6763_v29 = vpop.f32.mrf.mxu1  ;;  %v6108_v15 = vld [vmem:[%s7191_s4 + $0x3f0] sm:$0xff]  ;;  %v6083_v16 = vld [vmem:[%s7191_s4 + $0x328] sm:$0xff]  ;;  %v6125_v1 = vld [vmem:[%s7193_s6 + $0x78] sm:$0xff] }
 0x18d   :  { %3234 = vmatpush.bf16.msrb.mxu2 %v6053_v9  ;;  %3247 = vmatpush.bf16.msrb.mxu3 %v6061_v10  ;;  %v2087_v9 = vpack.c.bf16 %v2063_v46, %v2063_v46  ;;  %v6084_v10 = vld [vmem:[%s7191_s4 + $0x330] sm:$0xff] }
 0x18e   :  { %3260 = vmatpush.bf16.msra.mxu0 %v6069_v13  ;;  %3273 = vmatpush.bf16.msra.mxu1 %v6077_v14  ;;  %v2089_v13 = vpack.c.bf16 %v2065_v7, %v2065_v7  ;;  %v6100_v14 = vld [vmem:[%s7191_s4 + $0x3b0] sm:$0xff] }
 0x18f   :  { %3216 = vmatmul.bf16.vlgmr.msrb.gmra.mxu0 %v2084_v19  ;;  %3229 = vmatmul.bf16.vlgmr.msrb.gmra.mxu1 %v2085_v20  ;;  %v6789_v39 = vpop.f32.mrf.mxu2  ;;  %v6791_v40 = vpop.f32.mrf.mxu3  ;;  %v6107_v19 = vld [vmem:[%s7191_s4 + $0x3e8] sm:$0xff] }
 0x191   :  { %3235 = vmatpush.bf16.msrb.mxu2 %v6052_v17  ;;  %3248 = vmatpush.bf16.msrb.mxu3 %v6060_v18  ;;  %v6091_v17 = vld [vmem:[%s7191_s4 + $0x368] sm:$0xff] }
 0x192   :  { %3261 = vmatpush.bf16.msra.mxu0 %v6068_v21  ;;  %3274 = vmatpush.bf16.msra.mxu1 %v6076_v23  ;;  %v6099_v18 = vld [vmem:[%s7191_s4 + $0x3a8] sm:$0xff]  ;;  %v6082_v23 = vld [vmem:[%s7191_s4 + $0x320] sm:$0xff] }
 0x194   :  { %v1935_v42 = vpop.f32.mrf.mxu0  ;;  %v1948_v43 = vpop.f32.mrf.mxu1 }
 0x195   :  { %3236 = vmatpush.bf16.msrb.mxu2 %v6051_v24  ;;  %3249 = vmatpush.bf16.msrb.mxu3 %v6059_v25  ;;  %v6090_v24 = vld [vmem:[%s7191_s4 + $0x360] sm:$0xff]  ;;  %v6088_v42 = vld [vmem:[%s7191_s4 + $0x350] sm:$0xff] }
 0x196   :  { %3262 = vmatpush.bf16.msra.mxu0 %v6067_v26  ;;  %3275 = vmatpush.bf16.msra.mxu1 %v6075_v27  ;;  %v6098_v25 = vld [vmem:[%s7191_s4 + $0x3a0] sm:$0xff]  ;;  %v6081_v27 = vld [vmem:[%s7191_s4 + $0x318] sm:$0xff]  ;;  %v6096_v43 = vld [vmem:[%s7191_s4 + $0x390] sm:$0xff] }
 0x197   :  { %v1909_v59 = vpop.f32.mrf.mxu2  ;;  %v1922_v60 = vpop.f32.mrf.mxu3  ;;  %v6106_v26 = vld [vmem:[%s7191_s4 + $0x3e0] sm:$0xff] }
 0x198   :  { %v1947_v60 = vadd.f32 %v6763_v29, %v749_v51  ;;  %v6127_v51 = vld [vmem:[%s7193_s6 + $0x88] sm:$0xff] }
 0x199   :  { %3237 = vmatpush.bf16.msrb.mxu2 %v6050_v30  ;;  %3250 = vmatpush.bf16.msrb.mxu3 %v6058_v31  ;;  %v6089_v30 = vld [vmem:[%s7191_s4 + $0x358] sm:$0xff] }
 0x19a   :  { %3263 = vmatpush.bf16.msra.mxu0 %v6066_v32  ;;  %3276 = vmatpush.bf16.msra.mxu1 %v6074_v33  ;;  %v6097_v31 = vld [vmem:[%s7191_s4 + $0x398] sm:$0xff] }
 0x19b   :  { %v6105_v32 = vld [vmem:[%s7191_s4 + $0x3d8] sm:$0xff] }
 0x19d   :  { %3238 = vmatpush.bf16.msrb.mxu2 %v6049_v34  ;;  %3251 = vmatpush.bf16.msrb.mxu3 %v6057_v35 }
 0x19e   :  { %3264 = vmatpush.bf16.msra.mxu0 %v6065_v37  ;;  %3277 = vmatpush.bf16.msra.mxu1 %v6073_v38  ;;  %v6080_v38 = vld [vmem:[%s7191_s4 + $0x310] sm:$0xff] }
 0x1a1   :  { %3239 = vmatpush.bf16.msrb.mxu2 %v6048_v44  ;;  %3252 = vmatpush.bf16.msrb.mxu3 %v6056_v47  ;;  %v6104_v44 = vld [vmem:[%s7191_s4 + $0x3d0] sm:$0xff]  ;;  %v746_v47 = vperm.slane %v6796_v41, 4 }
 0x1a2   :  { %3265 = vmatpush.bf16.msra.mxu0 %v6064_v49  ;;  %3278 = vmatpush.bf16.msra.mxu1 %v6072_v50  ;;  %v747_v49 = vperm.slane %v6796_v41, 5  ;;  %v748_v50 = vperm.slane %v6796_v41, 6  ;;  %v6103_v41 = vld [vmem:[%s7191_s4 + $0x3c8] sm:$0xff] }
 0x1a4   :  { %v1934_v59 = vadd.f32 %v6761_v28, %v748_v50  ;;  %v6102_v28 = vld [vmem:[%s7191_s4 + $0x3c0] sm:$0xff]  ;;  %v6119_v50 = vld [vmem:[%s7193_s6 + $0x48] sm:$0xff] }
 0x1a5   :  { %3240 = vmatpush.bf16.msrb.mxu2 %v6047_v55  ;;  %3253 = vmatpush.bf16.msrb.mxu3 %v6055_v56 }
 0x1a6   :  { %3266 = vmatpush.bf16.msra.mxu0 %v6063_v57  ;;  %3279 = vmatpush.bf16.msra.mxu1 %v6071_v58  ;;  %v1908_v57 = vadd.f32 %v6789_v39, %v746_v47  ;;  %v1921_v58 = vadd.f32 %v6791_v40, %v747_v49  ;;  %v6094_v39 = vld [vmem:[%s7191_s4 + $0x380] sm:$0xff]  ;;  %v6111_v49 = vld [vmem:[%s7193_s6 + $0x8] sm:$0xff] }
 0x1a8   :  { %v2066_v29 = vmax.f32 %v1908_v57, 0.0  ;;  %v2067_v40 = vmax.f32 %v1921_v58, 0.0  ;;  %v6110_v58 = vld [vmem:[%s7193_s6] sm:$0xff] }
 0x1a9   :  { %3241 = vmatpush.bf16.msrb.mxu2 %v6046_v2  ;;  %3254 = vmatpush.bf16.msrb.mxu3 %v6054_v3  ;;  %v2068_v2 = vmax.f32 %v1934_v59, 0.0  ;;  %v2069_v3 = vmax.f32 %v1947_v60, 0.0  ;;  %v6118_v59 = vld [vmem:[%s7193_s6 + $0x40] sm:$0xff]  ;;  %v6149_v60 = vld [vmem:[%s7193_s6 + $0x138] sm:$0xff] }
 0x1aa   :  { %3267 = vmatpush.bf16.msra.mxu0 %v6062_v45  ;;  %3280 = vmatpush.bf16.msra.mxu1 %v6070_v22  ;;  %v6133_v45 = vld [vmem:[%s7193_s6 + $0xb8] sm:$0xff]  ;;  %v2090_v36 = vpack.c.bf16 %v2066_v29, %v2066_v29  ;;  %v2091_v46 = vpack.c.bf16 %v2067_v40, %v2067_v40 }
 0x1ab   :  { %v6141_v22 = vld [vmem:[%s7193_s6 + $0xf8] sm:$0xff]  ;;  %v2092_v6 = vpack.c.bf16 %v2068_v2, %v2068_v2  ;;  %v2093_v7 = vpack.c.bf16 %v2069_v3, %v2069_v3  ;;  %v6156_v2 = vld [vmem:[%s7193_s6 + $0x170] sm:$0xff] }
 0x1ac   :  { %3242 = vmatmul.bf16.vlgmr.msrb.gmra.mxu2 %v2086_v8  ;;  %3255 = vmatmul.bf16.vlgmr.msrb.gmra.mxu3 %v2087_v9  ;;  %v6878_v20 = vpop.f32.mrf.mxu0  ;;  %v6880_v21 = vpop.f32.mrf.mxu1  ;;  %v6115_v8 = vld [vmem:[%s7193_s6 + $0x28] sm:$0xff]  ;;  %v6173_v29 = vld [vmem:[%s7193_s6 + $0x1f8] sm:$0xff] }
 0x1ad   :  { %3286 = vmatpush.bf16.msra.mxu2 %v6085_v4  ;;  %3299 = vmatpush.bf16.msra.mxu3 %v6093_v5  ;;  %v6116_v4 = vld [vmem:[%s7193_s6 + $0x30] sm:$0xff]  ;;  %v6123_v9 = vld [vmem:[%s7193_s6 + $0x68] sm:$0xff] }
 0x1ae   :  { %3312 = vmatpush.bf16.msrb.mxu0 %v6101_v61  ;;  %3325 = vmatpush.bf16.msrb.mxu1 %v6109_v62  ;;  %v6124_v5 = vld [vmem:[%s7193_s6 + $0x70] sm:$0xff] }
 0x1af   :  { %3268 = vmatmul.bf16.vlgmr.msra.gmra.mxu0 %v2088_v12  ;;  %3281 = vmatmul.bf16.vlgmr.msra.gmra.mxu1 %v2089_v13  ;;  %v6906_v33 = vpop.f32.mrf.mxu2  ;;  %v6908_v34 = vpop.f32.mrf.mxu3  ;;  %v6132_v61 = vld [vmem:[%s7193_s6 + $0xb0] sm:$0xff] }
 0x1b0   :  { %v6140_v62 = vld [vmem:[%s7193_s6 + $0xf0] sm:$0xff] }
 0x1b1   :  { %3287 = vmatpush.bf16.msra.mxu2 %v6084_v10  ;;  %3300 = vmatpush.bf16.msra.mxu3 %v6092_v11  ;;  %v6131_v10 = vld [vmem:[%s7193_s6 + $0xa8] sm:$0xff] }
 0x1b2   :  { %3313 = vmatpush.bf16.msrb.mxu0 %v6100_v14  ;;  %3326 = vmatpush.bf16.msrb.mxu1 %v6108_v15  ;;  %v6139_v11 = vld [vmem:[%s7193_s6 + $0xe8] sm:$0xff]  ;;  %v6114_v14 = vld [vmem:[%s7193_s6 + $0x20] sm:$0xff] }
 0x1b3   :  { %v6122_v15 = vld [vmem:[%s7193_s6 + $0x60] sm:$0xff] }
 0x1b4   :  { %v1987_v35 = vpop.f32.mrf.mxu0  ;;  %v2000_v37 = vpop.f32.mrf.mxu1 }
 0x1b5   :  { %3288 = vmatpush.bf16.msra.mxu2 %v6083_v16  ;;  %3301 = vmatpush.bf16.msra.mxu3 %v6091_v17  ;;  %v6130_v16 = vld [vmem:[%s7193_s6 + $0xa0] sm:$0xff]  ;;  %v6120_v35 = vld [vmem:[%s7193_s6 + $0x50] sm:$0xff] }
 0x1b6   :  { %3314 = vmatpush.bf16.msrb.mxu0 %v6099_v18  ;;  %3327 = vmatpush.bf16.msrb.mxu1 %v6107_v19  ;;  %v6138_v17 = vld [vmem:[%s7193_s6 + $0xe0] sm:$0xff]  ;;  %v6113_v18 = vld [vmem:[%s7193_s6 + $0x18] sm:$0xff]  ;;  %v6128_v37 = vld [vmem:[%s7193_s6 + $0x90] sm:$0xff] }
 0x1b7   :  { %v1961_v55 = vpop.f32.mrf.mxu2  ;;  %v1974_v56 = vpop.f32.mrf.mxu3  ;;  %v6121_v19 = vld [vmem:[%s7193_s6 + $0x58] sm:$0xff] }
 0x1b9   :  { %3289 = vmatpush.bf16.msra.mxu2 %v6082_v23  ;;  %3302 = vmatpush.bf16.msra.mxu3 %v6090_v24  ;;  %v6129_v23 = vld [vmem:[%s7193_s6 + $0x98] sm:$0xff] }
 0x1ba   :  { %3315 = vmatpush.bf16.msrb.mxu0 %v6098_v25  ;;  %3328 = vmatpush.bf16.msrb.mxu1 %v6106_v26  ;;  %v6137_v24 = vld [vmem:[%s7193_s6 + $0xd8] sm:$0xff] }
 0x1bd   :  { %3290 = vmatpush.bf16.msra.mxu2 %v6081_v27  ;;  %3303 = vmatpush.bf16.msra.mxu3 %v6089_v30  ;;  %v7025_v27 = vld [vmem:[%s7190_s3 + $0x10] sm:$0xff] }
 0x1be   :  { %3316 = vmatpush.bf16.msrb.mxu0 %v6097_v31  ;;  %3329 = vmatpush.bf16.msrb.mxu1 %v6105_v32  ;;  %v6112_v32 = vld [vmem:[%s7193_s6 + $0x10] sm:$0xff]  ;;  %v753_v47 = vperm.slane %v7025_v27, 3 }
 0x1c0   :  { %v1999_v57 = vadd.f32 %v6880_v21, %v753_v47  ;;  %v757_v47 = vperm.slane %v7025_v27, 7 }
 0x1c1   :  { %3291 = vmatpush.bf16.msra.mxu2 %v6080_v38  ;;  %3304 = vmatpush.bf16.msra.mxu3 %v6088_v42  ;;  %v6136_v38 = vld [vmem:[%s7193_s6 + $0xd0] sm:$0xff]  ;;  %v750_v42 = vperm.slane %v7025_v27, 0 }
 0x1c2   :  { %3317 = vmatpush.bf16.msrb.mxu0 %v6096_v43  ;;  %3330 = vmatpush.bf16.msrb.mxu1 %v6104_v44  ;;  %v751_v43 = vperm.slane %v7025_v27, 1  ;;  %v752_v44 = vperm.slane %v7025_v27, 2 }
 0x1c4   :  { %v1973_v55 = vadd.f32 %v6908_v34, %v751_v43  ;;  %v1986_v56 = vadd.f32 %v6878_v20, %v752_v44  ;;  %v6134_v20 = vld [vmem:[%s7193_s6 + $0xc0] sm:$0xff]  ;;  %v6168_v43 = vld [vmem:[%s7193_s6 + $0x1d0] sm:$0xff]  ;;  %v756_v44 = vperm.slane %v7025_v27, 6 }
 0x1c5   :  { %3292 = vmatpush.bf16.msra.mxu2 %v6079_v52  ;;  %3305 = vmatpush.bf16.msra.mxu3 %v6087_v53  ;;  %v6135_v52 = vld [vmem:[%s7193_s6 + $0xc8] sm:$0xff] }
 0x1c6   :  { %3318 = vmatpush.bf16.msrb.mxu0 %v6095_v54  ;;  %3331 = vmatpush.bf16.msrb.mxu1 %v6103_v41  ;;  %v1960_v41 = vadd.f32 %v6906_v33, %v750_v42  ;;  %v6126_v33 = vld [vmem:[%s7193_s6 + $0x80] sm:$0xff]  ;;  %v2071_v34 = vmax.f32 %v1973_v55, 0.0  ;;  %v6160_v42 = vld [vmem:[%s7193_s6 + $0x190] sm:$0xff] }
 0x1c8   :  { %v2070_v21 = vmax.f32 %v1960_v41, 0.0  ;;  %v6167_v41 = vld [vmem:[%s7193_s6 + $0x1c8] sm:$0xff] }
 0x1c9   :  { %3293 = vmatpush.bf16.msra.mxu2 %v6078_v48  ;;  %3306 = vmatpush.bf16.msra.mxu3 %v6086_v63  ;;  %v6157_v48 = vld [vmem:[%s7193_s6 + $0x178] sm:$0xff]  ;;  %v2072_v63 = vmax.f32 %v1986_v56, 0.0 }
 0x1ca   :  { %3319 = vmatpush.bf16.msrb.mxu0 %v6094_v39  ;;  %3332 = vmatpush.bf16.msrb.mxu1 %v6102_v28  ;;  %v2073_v39 = vmax.f32 %v1999_v57, 0.0  ;;  %v6165_v28 = vld [vmem:[%s7193_s6 + $0x1b8] sm:$0xff]  ;;  %v2094_v40 = vpack.c.bf16 %v2070_v21, %v2070_v21 }
 0x1cb   :  { %v2096_v3 = vpack.c.bf16 %v2072_v63, %v2072_v63 }
 0x1cc   :  { %3294 = vmatmul.bf16.vlgmr.msra.gmra.mxu2 %v2090_v36  ;;  %3307 = vmatmul.bf16.vlgmr.msra.gmra.mxu3 %v2091_v46  ;;  %v6990_v12 = vpop.f32.mrf.mxu0  ;;  %v6992_v13 = vpop.f32.mrf.mxu1  ;;  %v6172_v36 = vld [vmem:[%s7193_s6 + $0x1f0] sm:$0xff]  ;;  %v6147_v46 = vld [vmem:[%s7193_s6 + $0x128] sm:$0xff] }
 0x1cd   :  { %3875 = vmatpush.bf16.msrb.mxu2 %v6117_v0  ;;  %3888 = vmatpush.bf16.msrb.mxu3 %v6125_v1  ;;  %v2095_v0 = vpack.c.bf16 %v2071_v34, %v2071_v34  ;;  %v6148_v1 = vld [vmem:[%s7193_s6 + $0x130] sm:$0xff]  ;;  %v2038_v57 = vadd.f32 %v6990_v12, %v756_v44  ;;  %v6158_v12 = vld [vmem:[%s7193_s6 + $0x180] sm:$0xff] }
 0x1ce   :  { %3901 = vmatpush.bf16.msra.mxu0 %v6133_v45  ;;  %3914 = vmatpush.bf16.msra.mxu1 %v6141_v22  ;;  %v2097_v45 = vpack.c.bf16 %v2073_v39, %v2073_v39  ;;  %v6164_v22 = vld [vmem:[%s7193_s6 + $0x1b0] sm:$0xff] }
 0x1cf   :  { %3320 = vmatmul.bf16.vlgmr.msrb.gmra.mxu0 %v2092_v6  ;;  %3333 = vmatmul.bf16.vlgmr.msrb.gmra.mxu1 %v2093_v7  ;;  %v7018_v25 = vpop.f32.mrf.mxu2  ;;  %v7020_v26 = vpop.f32.mrf.mxu3  ;;  %v6171_v6 = vld [vmem:[%s7193_s6 + $0x1e8] sm:$0xff] }
 0x1d1   :  { %3876 = vmatpush.bf16.msrb.mxu2 %v6116_v4  ;;  %3889 = vmatpush.bf16.msrb.mxu3 %v6124_v5  ;;  %v6155_v4 = vld [vmem:[%s7193_s6 + $0x168] sm:$0xff] }
 0x1d2   :  { %3902 = vmatpush.bf16.msra.mxu0 %v6132_v61  ;;  %3915 = vmatpush.bf16.msra.mxu1 %v6140_v62  ;;  %v6163_v5 = vld [vmem:[%s7193_s6 + $0x1a8] sm:$0xff]  ;;  %v6146_v62 = vld [vmem:[%s7193_s6 + $0x120] sm:$0xff] }
 0x1d4   :  { %v2039_v30 = vpop.f32.mrf.mxu0  ;;  %v2052_v31 = vpop.f32.mrf.mxu1 }
 0x1d5   :  { %3877 = vmatpush.bf16.msrb.mxu2 %v6115_v8  ;;  %3890 = vmatpush.bf16.msrb.mxu3 %v6123_v9  ;;  %v6154_v8 = vld [vmem:[%s7193_s6 + $0x160] sm:$0xff] }
 0x1d6   :  { %3903 = vmatpush.bf16.msra.mxu0 %v6131_v10  ;;  %3916 = vmatpush.bf16.msra.mxu1 %v6139_v11  ;;  %v6162_v9 = vld [vmem:[%s7193_s6 + $0x1a0] sm:$0xff] }
 0x1d7   :  { %v2013_v53 = vpop.f32.mrf.mxu2  ;;  %v2026_v54 = vpop.f32.mrf.mxu3  ;;  %v6170_v10 = vld [vmem:[%s7193_s6 + $0x1e0] sm:$0xff] }
 0x1d8   :  { %v6179_v11 = vld [vmem:[%s7192_s5] ss:$0 sm:$0xff]  ;;  %s3987_s5 = sshll.u32 %s7195_s8, 4  ;;  %s6267_s8 = smov [#allocation6]   ;;  %s3988_s5 = int_to_ptr.hbm [resolvable:$true] %s3987_s5 }
 0x1d9   :  { %3878 = vmatpush.bf16.msrb.mxu2 %v6114_v14  ;;  %3891 = vmatpush.bf16.msrb.mxu3 %v6122_v15  ;;  %v6145_v14 = vld [vmem:[%s7193_s6 + $0x118] sm:$0xff]  ;;  %s3996_s30 = sshll.u32 %s6267_s8, 4  ;;  %s3997_s30 = int_to_ptr.vmem [resolvable:$true] %s3996_s30 }
 0x1da   :  { %3904 = vmatpush.bf16.msra.mxu0 %v6130_v16  ;;  %3917 = vmatpush.bf16.msra.mxu1 %v6138_v17  ;;  %v6153_v15 = vld [vmem:[%s7193_s6 + $0x158] sm:$0xff] }
 0x1db   :  { %v6161_v16 = vld [vmem:[%s7193_s6 + $0x198] sm:$0xff] }
 0x1dc   :  { %v6169_v17 = vld [vmem:[%s7193_s6 + $0x1d8] sm:$0xff] }
 0x1dd   :  { %3879 = vmatpush.bf16.msrb.mxu2 %v6113_v18  ;;  %3892 = vmatpush.bf16.msrb.mxu3 %v6121_v19 }
 0x1de   :  { %3905 = vmatpush.bf16.msra.mxu0 %v6129_v23  ;;  %3918 = vmatpush.bf16.msra.mxu1 %v6137_v24 }
 0x1e1   :  { %3880 = vmatpush.bf16.msrb.mxu2 %v6112_v32  ;;  %3893 = vmatpush.bf16.msrb.mxu3 %v6120_v35  ;;  %v6144_v32 = vld [vmem:[%s7193_s6 + $0x110] sm:$0xff] }
 0x1e2   :  { %3906 = vmatpush.bf16.msra.mxu0 %v6128_v37  ;;  %3919 = vmatpush.bf16.msra.mxu1 %v6136_v38  ;;  %v6152_v35 = vld [vmem:[%s7193_s6 + $0x150] sm:$0xff]  ;;  %v754_v37 = vperm.slane %v7025_v27, 4  ;;  %v755_v38 = vperm.slane %v7025_v27, 5  ;;  %v6159_v27 = vld [vmem:[%s7193_s6 + $0x188] sm:$0xff] }
 0x1e4   :  { %v2012_v53 = vadd.f32 %v7018_v25, %v754_v37  ;;  %v2025_v54 = vadd.f32 %v7020_v26, %v755_v38  ;;  %v6142_v25 = vld [vmem:[%s7193_s6 + $0x100] sm:$0xff] }
 0x1e5   :  { %3881 = vmatpush.bf16.msrb.mxu2 %v6111_v49  ;;  %3894 = vmatpush.bf16.msrb.mxu3 %v6119_v50  ;;  %v6143_v50 = vld [vmem:[%s7193_s6 + $0x108] sm:$0xff]  ;;  %v6150_v26 = vld [vmem:[%s7193_s6 + $0x140] sm:$0xff] }
 0x1e6   :  { %3907 = vmatpush.bf16.msra.mxu0 %v6127_v51  ;;  %3920 = vmatpush.bf16.msra.mxu1 %v6135_v52  ;;  %v6151_v51 = vld [vmem:[%s7193_s6 + $0x148] sm:$0xff] }
 0x1e9   :  { %3882 = vmatpush.bf16.msrb.mxu2 %v6110_v58  ;;  %3895 = vmatpush.bf16.msrb.mxu3 %v6118_v59  ;;  %v2051_v58 = vadd.f32 %v6992_v13, %v757_v47  ;;  %v2074_v59 = vmax.f32 %v2012_v53, 0.0  ;;  %v6166_v13 = vld [vmem:[%s7193_s6 + $0x1c0] sm:$0xff]  ;;  %s6266_s6 = smov [#allocation5]  }
 0x1ea   :  { %3908 = vmatpush.bf16.msra.mxu0 %v6126_v33  ;;  %3921 = vmatpush.bf16.msra.mxu1 %v6134_v20  ;;  %v2075_v33 = vmax.f32 %v2025_v54, 0.0  ;;  %v2076_v20 = vmax.f32 %v2038_v57, 0.0  ;;  %s3985_s26 = sshll.u32 %s6266_s6, 4  ;;  %s3986_s26 = int_to_ptr.vmem [resolvable:$true] %s3985_s26 }
 0x1eb   :  { %v2077_v21 = vmax.f32 %v2051_v58, 0.0  ;;  %v2098_v34 = vpack.c.bf16 %v2074_v59, %v2074_v59 }
 0x1ec   :  { %3883 = vmatmul.bf16.vlgmr.msrb.gmra.mxu2 %v2094_v40  ;;  %3896 = vmatmul.bf16.vlgmr.msrb.gmra.mxu3 %v2095_v0  ;;  %v3165_v7 = vpop.f32.mrf.mxu0  ;;  %v3178_v61 = vpop.f32.mrf.mxu1 }
 0x1ed   :  { %3927 = vmatpush.bf16.msra.mxu2 %v6149_v60  ;;  %3940 = vmatpush.bf16.msra.mxu3 %v6157_v48  ;;  %v2099_v60 = vpack.c.bf16 %v2075_v33, %v2075_v33  ;;  %v2100_v48 = vpack.c.bf16 %v2076_v20, %v2076_v20  ;;  %v2101_v63 = vpack.c.bf16 %v2077_v21, %v2077_v21 }
 0x1ee   :  { %3953 = vmatpush.bf16.msrb.mxu0 %v6165_v28  ;;  %3966 = vmatpush.bf16.msrb.mxu1 %v6173_v29 }
 0x1ef   :  { %3909 = vmatmul.bf16.vlgmr.msra.gmra.mxu0 %v2096_v3  ;;  %3922 = vmatmul.bf16.vlgmr.msra.gmra.mxu1 %v2097_v45  ;;  %v3139_v18 = vpop.f32.mrf.mxu2  ;;  %v3152_v19 = vpop.f32.mrf.mxu3 }
 0x1f0   :  { %v3140_v23 = vadd.f32 %v6179_v11, %v3139_v18 }
 0x1f1   :  { %3928 = vmatpush.bf16.msra.mxu2 %v6148_v1  ;;  %3941 = vmatpush.bf16.msra.mxu3 %v6156_v2 }
 0x1f2   :  { %3954 = vmatpush.bf16.msrb.mxu0 %v6164_v22  ;;  %3967 = vmatpush.bf16.msrb.mxu1 %v6172_v36  ;;  %v3153_v24 = vadd.f32 %v3152_v19, %v3140_v23 }
 0x1f4   :  { %v3167_v30 = vpop.f32.mrf.mxu0  ;;  %v3180_v31 = vpop.f32.mrf.mxu1  ;;  %v3166_v49 = vadd.f32 %v3165_v7, %v3153_v24 }
 0x1f5   :  { %3929 = vmatpush.bf16.msra.mxu2 %v6147_v46  ;;  %3942 = vmatpush.bf16.msra.mxu3 %v6155_v4 }
 0x1f6   :  { %3955 = vmatpush.bf16.msrb.mxu0 %v6163_v5  ;;  %3968 = vmatpush.bf16.msrb.mxu1 %v6171_v6  ;;  %v3179_v52 = vadd.f32 %v3178_v61, %v3166_v49 }
 0x1f7   :  { %v3141_v55 = vpop.f32.mrf.mxu2  ;;  %v3154_v56 = vpop.f32.mrf.mxu3 }
 0x1f9   :  { %3930 = vmatpush.bf16.msra.mxu2 %v6146_v62  ;;  %3943 = vmatpush.bf16.msra.mxu3 %v6154_v8 }
 0x1fa   :  { %3956 = vmatpush.bf16.msrb.mxu0 %v6162_v9  ;;  %3969 = vmatpush.bf16.msrb.mxu1 %v6170_v10 }
 0x1fd   :  { %3931 = vmatpush.bf16.msra.mxu2 %v6145_v14  ;;  %3944 = vmatpush.bf16.msra.mxu3 %v6153_v15 }
 0x1fe   :  { %3957 = vmatpush.bf16.msrb.mxu0 %v6161_v16  ;;  %3970 = vmatpush.bf16.msrb.mxu1 %v6169_v17 }
 0x201   :  { %3932 = vmatpush.bf16.msra.mxu2 %v6144_v32  ;;  %3945 = vmatpush.bf16.msra.mxu3 %v6152_v35 }
 0x202   :  { %3958 = vmatpush.bf16.msrb.mxu0 %v6160_v42  ;;  %3971 = vmatpush.bf16.msrb.mxu1 %v6168_v43 }
 0x205   :  { %3933 = vmatpush.bf16.msra.mxu2 %v6143_v50  ;;  %3946 = vmatpush.bf16.msra.mxu3 %v6151_v51 }
 0x206   :  { %3959 = vmatpush.bf16.msrb.mxu0 %v6159_v27  ;;  %3972 = vmatpush.bf16.msrb.mxu1 %v6167_v41 }
 0x209   :  { %3934 = vmatpush.bf16.msra.mxu2 %v6142_v25  ;;  %3947 = vmatpush.bf16.msra.mxu3 %v6150_v26 }
 0x20a   :  { %3960 = vmatpush.bf16.msrb.mxu0 %v6158_v12  ;;  %3973 = vmatpush.bf16.msrb.mxu1 %v6166_v13  ;;  %v6180_v13 = vld [vmem:[%s7194_s7] ss:$0 sm:$0xff] }
 0x20c   :  { %3935 = vmatmul.bf16.vlgmr.msra.gmra.mxu2 %v2098_v34  ;;  %3948 = vmatmul.bf16.vlgmr.msra.gmra.mxu3 %v2099_v60  ;;  %v3217_v39 = vpop.f32.mrf.mxu0  ;;  %v3230_v28 = vpop.f32.mrf.mxu1 }
 0x20d   :  { %3961 = vmatmul.bf16.vlgmr.msrb.gmra.mxu0 %v2100_v48  ;;  %3974 = vmatmul.bf16.vlgmr.msrb.gmra.mxu1 %v2101_v63 }
 0x20f   :  { %v3191_v29 = vpop.f32.mrf.mxu2  ;;  %v3204_v40 = vpop.f32.mrf.mxu3 }
 0x210   :  { %v3192_v4 = vadd.f32 %v3191_v29, %v3179_v52 }
 0x212   :  { %v3205_v7 = vadd.f32 %v3204_v40, %v3192_v4 }
 0x214   :  { %v3219_v0 = vpop.f32.mrf.mxu0  ;;  %v3232_v1 = vpop.f32.mrf.mxu1  ;;  %v3218_v8 = vadd.f32 %v3217_v39, %v3205_v7 }
 0x216   :  { %v3231_v9 = vadd.f32 %v3230_v28, %v3218_v8 }
 0x217   :  { %v3193_v2 = vpop.f32.mrf.mxu2  ;;  %v3206_v3 = vpop.f32.mrf.mxu3 }
 0x22c   :  { %v3269_v45 = vpop.f32.mrf.mxu0  ;;  %v3282_v22 = vpop.f32.mrf.mxu1 }
 0x22f   :  { %v3243_v36 = vpop.f32.mrf.mxu2  ;;  %v3256_v46 = vpop.f32.mrf.mxu3 }
 0x230   :  { %v3244_v10 = vadd.f32 %v3243_v36, %v3231_v9 }
 0x232   :  { %v3257_v11 = vadd.f32 %v3256_v46, %v3244_v10 }
 0x234   :  { %v3271_v5 = vpop.f32.mrf.mxu0  ;;  %v3284_v6 = vpop.f32.mrf.mxu1  ;;  %v3270_v14 = vadd.f32 %v3269_v45, %v3257_v11 }
 0x236   :  { %v3283_v17 = vadd.f32 %v3282_v22, %v3270_v14 }
 0x237   :  { %v3245_v61 = vpop.f32.mrf.mxu2  ;;  %v3258_v62 = vpop.f32.mrf.mxu3 }
 0x24c   :  { %v3321_v15 = vpop.f32.mrf.mxu0  ;;  %v3334_v16 = vpop.f32.mrf.mxu1 }
 0x24f   :  { %v3295_v18 = vpop.f32.mrf.mxu2  ;;  %v3308_v19 = vpop.f32.mrf.mxu3 }
 0x250   :  { %v3296_v23 = vadd.f32 %v3295_v18, %v3283_v17 }
 0x252   :  { %v3309_v24 = vadd.f32 %v3308_v19, %v3296_v23 }
 0x254   :  { %v3323_v30 = vpop.f32.mrf.mxu0  ;;  %v3336_v31 = vpop.f32.mrf.mxu1  ;;  %v3322_v32 = vadd.f32 %v3321_v15, %v3309_v24 }
 0x256   :  { %v3335_v35 = vadd.f32 %v3334_v16, %v3322_v32 }
 0x257   :  { %v3297_v37 = vpop.f32.mrf.mxu2  ;;  %v3310_v38 = vpop.f32.mrf.mxu3 }
 0x258   :  { %v5485_v42 = vmul.f32 -1.442695, %v3335_v35 }
 0x25a   :  { %6181 = vpow2.f32 %v5485_v42 }
 0x260   :  { %v6182_v43 = vpop.eup %6181 }
 0x261   :  { %v3341_v44 = vadd.f32 1.0, %v6182_v43 }
 0x263   :  { %6183 = vrcp.f32 %v3341_v44  ;;  %v3353_v27 = vand.u32 2147483648, %v3341_v44  ;;  %v3351_v55 = vand.u32 2147483647, %v3341_v44  ;;  %vm3347_vm1 = vweird.f32 %v3341_v44 }
 0x265   :  { %v3354_v25 = vor.u32 1.1754944e-38, %v3353_v27  ;;  %vm3352_vm4 = vcmp.eq.f32.partialorder %v3351_v55, 8.507059e+37 }
 0x269   :  { %v6184_v50 = vpop.eup %6183 }
 0x26a   :  { %v3343_v51 = vmul.f32 %v6184_v50, %v3341_v44  ;;  %vm3348_vm0 = vweird.f32 %v6184_v50 }
 0x26b   :  { %vm3349_vm2 = vmor %vm3347_vm1, %vm3348_vm0 }
 0x26c   :  { %v3910_v47 = vpop.f32.mrf.mxu0  ;;  %v3923_v49 = vpop.f32.mrf.mxu1  ;;  %v3344_v52 = vsub.f32 1.0, %v3343_v51 }
 0x26e   :  { %v3345_v41 = vmul.f32 %v6184_v50, %v3344_v52 }
 0x26f   :  { %v3884_v53 = vpop.f32.mrf.mxu2  ;;  %v3897_v54 = vpop.f32.mrf.mxu3 }
 0x270   :  { %v3346_v58 = vadd.f32 %v6184_v50, %v3345_v41  ;;  %v3885_v20 = vadd.f32 %v6180_v13, %v3884_v53 }
 0x272   :  { %v3350_v26 = vsel %vm3349_vm2, %v6184_v50, %v3346_v58  ;;  %v3898_v21 = vadd.f32 %v3897_v54, %v3885_v20 }
 0x273   :  { %v3355_v59 = vsel %vm3352_vm4, %v3354_v25, %v3350_v26 }
 0x274   :  { %v3912_v56 = vpop.f32.mrf.mxu0  ;;  %v3925_v57 = vpop.f32.mrf.mxu1  ;;  %3358 = vst.msk [vmem:[#allocation5] sm:$0xff] %vm3357_vm3, %v3355_v59  ;;  %v3911_v34 = vadd.f32 %v3910_v47, %v3898_v21 }
 0x275   :  { %3990 = dma.vmem_to_hbm [thread:$0]  %s3986_s26, 128, %s3988_s5, [#allocation4]  }
 0x276   :  { %v3924_v63 = vadd.f32 %v3923_v49, %v3911_v34 }
 0x277   :  { %v3886_v33 = vpop.f32.mrf.mxu2  ;;  %v3899_v12 = vpop.f32.mrf.mxu3 }
 0x28a   :  { %v3962_v60 = vpop.f32.mrf.mxu0  ;;  %v3975_v48 = vpop.f32.mrf.mxu1 }
 0x28f   :  { %v3936_v39 = vpop.f32.mrf.mxu2  ;;  %v3949_v28 = vpop.f32.mrf.mxu3 }
 0x290   :  { %v3937_v29 = vadd.f32 %v3936_v39, %v3924_v63 }
 0x292   :  { %v3950_v40 = vadd.f32 %v3949_v28, %v3937_v29  ;;  %v3964_v0 = vpop.f32.mrf.mxu0  ;;  %v3977_v1 = vpop.f32.mrf.mxu1 }
 0x294   :  { %v3963_v2 = vadd.f32 %v3962_v60, %v3950_v40 }
 0x296   :  { %v3976_v3 = vadd.f32 %v3975_v48, %v3963_v2 }
 0x297   :  { %v3938_v45 = vpop.f32.mrf.mxu2  ;;  %v3951_v22 = vpop.f32.mrf.mxu3 }
 0x298   :  { %3979 = vst [vmem:[#allocation6] sm:$0xff] %v3976_v3 }
 0x299   :  { %4001 = dma.vmem_to_hbm [thread:$0]  %s3997_s30, 128, %s3999_s11, [#allocation7]  }
 0x29a   :  { %6259 = dma.done.wait [#allocation4], 128  }
 0x29b   :  { %6260 = vsyncadd [#allocation4], 4294967168 }
 0x29c   :  { %6261 = dma.done.wait [#allocation7], 128  }
 0x29d   :  { %6262 = vsyncadd [#allocation7], 4294967168 }
 0x29e   :  { %4010 = vsyncpa [#allocation3], 1 }
 0x29f   :  { %4011 = vsyncpa [#allocation4], 1 }
 0x2a0   :  { %4012 = vsyncpa [#allocation7], 1 }

</bundles_post_ra>
